<compile_context>
chip_gen: v7x
topology: tpu7x:2x2x1
jax: 0.10.0
libtpu: 0.0.40
codegen_flags: <defaults>
</compile_context>

<pallas_src>
import functools

import jax
import jax.numpy as jnp
from jax.experimental import pallas as pl
from jax.experimental.pallas import tpu as pltpu


# ----------------------------- fused RDB kernel ------------------------------

def _rdb_kernel(x_ref, m_ref,
                w1_ref, w2_ref, w3_ref, w4_ref, w5_ref,
                b1_ref, b2_ref, b3_ref, b4_ref, b5_ref,
                out_ref, patch_ref, *, H, W, nf, gc):
    # x_ref:     (nf, H*W)            one batch element, channels-in-sublanes
    # m_ref:     (9, H*W)             1.0 where the 3x3 tap is in-bounds
    # w*_ref:    (Cout, 9*cmax)       tap-major, channel-padded weights
    # b*_ref:    (Cout, 1)
    # out_ref:   (nf, H*W)            RDB output  (x5 * 0.2 + x)
    # patch_ref: (9*cmax, H*W) VMEM   shared im2col scratch for all 5 convs
    HW = H * W
    cmax = nf + 4 * gc
    offsets = [(dy, dx) for dy in (-1, 0, 1) for dx in (-1, 0, 1)]

    # Rows of channels not produced yet must read as exact zeros (their weight
    # columns are zero-padded, but the scratch may hold stale NaNs).
    patch_ref[...] = jnp.zeros_like(patch_ref)

    masks = m_ref[...]                                    # (9, HW) f32

    def fill_patch(vals, c0):
        """Append feature channels [c0, c0+n) to the im2col patch.

        For tap t = (dy, dx), output pixel p = y*W + x needs input pixel
        (y+dy, x+dx) = flat index p + dy*W + dx (zero outside the image), so
        each tap is a static lane rotation of the flattened image + a mask.
        """
        n = vals.shape[0]
        for t, (dy, dx) in enumerate(offsets):
            s = (dy * W + dx) % HW
            if s == 0:
                shifted = vals
            else:
                # left-rotate by s lanes: out[:, p] = vals[:, (p + s) % HW]
                shifted = jnp.concatenate([vals[:, s:], vals[:, :s]], axis=1)
            row = t * cmax + c0                           # static, 8-aligned
            patch_ref[row:row + n, :] = shifted * masks[t:t + 1, :]

    def conv(w_ref, b_ref, lrelu):
        # Single deep-K MXU matmul: (Cout, 9*cmax) @ (9*cmax, HW) -> (Cout, HW)
        acc = jnp.dot(w_ref[...], patch_ref[...],
                      preferred_element_type=jnp.float32)
        acc = acc + b_ref[...]                            # (Cout, 1) broadcast
        if lrelu:
            acc = jnp.where(acc >= 0.0, acc, 0.2 * acc)   # LeakyReLU(0.2)
        return acc

    x = x_ref[...].astype(jnp.float32)
    fill_patch(x, 0)
    x1 = conv(w1_ref, b1_ref, True);  fill_patch(x1, nf)
    x2 = conv(w2_ref, b2_ref, True);  fill_patch(x2, nf + gc)
    x3 = conv(w3_ref, b3_ref, True);  fill_patch(x3, nf + 2 * gc)
    x4 = conv(w4_ref, b4_ref, True);  fill_patch(x4, nf + 3 * gc)
    x5 = conv(w5_ref, b5_ref, False)
    out_ref[...] = (x5 * 0.2 + x).astype(out_ref.dtype)   # lane-dense store


# ----------------------------- host-side packing ------------------------------

def _pack_weight(w, cmax):
    """PyTorch (Cout, Cin, 3, 3) -> (Cout, 9*cmax), column = tap*cmax + channel,
    zero-padded over channels the conv does not consume."""
    cout, cin = w.shape[0], w.shape[1]
    w = jnp.transpose(w, (0, 2, 3, 1))                    # (Cout, ky, kx, Cin)
    w = jnp.pad(w, ((0, 0), (0, 0), (0, 0), (0, cmax - cin)))
    return w.reshape(cout, 9 * cmax)


def _tap_masks(H, W):
    """(9, H*W) f32: 1.0 where tap (dy, dx) stays inside the image."""
    y = jnp.arange(H).reshape(H, 1)
    x = jnp.arange(W).reshape(1, W)
    ms = []
    for dy in (-1, 0, 1):
        for dx in (-1, 0, 1):
            m = (y + dy >= 0) & (y + dy < H) & (x + dx >= 0) & (x + dx < W)
            ms.append(m.reshape(H * W))
    return jnp.stack(ms, axis=0).astype(jnp.float32)


def _rdb_pallas(x_flat, p, H, W, nf, gc):
    """One ResidualDenseBlock. x_flat: (B, nf, H*W) -> (B, nf, H*W)."""
    B, _, HW = x_flat.shape
    cmax = nf + 4 * gc

    masks = _tap_masks(H, W)
    ws = [_pack_weight(p[f"w{i}"], cmax) for i in range(1, 6)]
    bs = [p[f"b{i}"].reshape(-1, 1) for i in range(1, 6)]

    kern = functools.partial(_rdb_kernel, H=H, W=W, nf=nf, gc=gc)
    full2d = lambda b: (0, 0)

    in_specs = ([pl.BlockSpec((None, nf, HW), lambda b: (b, 0, 0)),
                 pl.BlockSpec((9, HW), full2d)]
                + [pl.BlockSpec(w.shape, full2d) for w in ws]
                + [pl.BlockSpec(bb.shape, full2d) for bb in bs])

    return pl.pallas_call(
        kern,
        out_shape=jax.ShapeDtypeStruct((B, nf, HW), x_flat.dtype),
        grid_spec=pltpu.PrefetchScalarGridSpec(
            num_scalar_prefetch=0,
            grid=(B,),
            in_specs=in_specs,
            out_specs=pl.BlockSpec((None, nf, HW), lambda b: (b, 0, 0)),
            scratch_shapes=[pltpu.VMEM((9 * cmax, HW), jnp.float32)],
        ),
        compiler_params=pltpu.CompilerParams(
            dimension_semantics=("parallel",)),
    )(x_flat, masks, *ws, *bs)


# ----------------------------- RRDB forward -----------------------------------

def rrdb_forward(x, params):
    """x: (B, num_feat, H, W) NCHW, PyTorch convention."""
    B, nf, H, W = x.shape
    gc = params["rdb1"]["w1"].shape[0]
    xf = x.reshape(B, nf, H * W)
    out = xf
    for name in ("rdb1", "rdb2", "rdb3"):
        out = _rdb_pallas(out, params[name], H, W, nf, gc)
    out = out * 0.2 + xf
    return out.reshape(B, nf, H, W)


# ----------------------------- parameter init ---------------------------------

def init_rrdb_params(key, num_feat, num_grow_ch):
    """Kaiming-like weights * 0.1 (as default_init_weights(scale=0.1)); small
    random biases so the bias path is exercised by the check."""
    params = {}
    for name in ("rdb1", "rdb2", "rdb3"):
        p = {}
        cins = [num_feat + i * num_grow_ch for i in range(5)]
        couts = [num_grow_ch] * 4 + [num_feat]
        for i, (cin, cout) in enumerate(zip(cins, couts), start=1):
            key, kw, kb = jax.random.split(key, 3)
            std = (2.0 / (cin * 9)) ** 0.5
            p[f"w{i}"] = jax.random.normal(kw, (cout, cin, 3, 3),
                                           jnp.float32) * std * 0.1
            p[f"b{i}"] = jax.random.normal(kb, (cout,), jnp.float32) * 0.01
        params[name] = p
    return params


# ----------------------------- pure-JAX reference ------------------------------

def _conv_ref(x, w, b, lrelu):
    out = jax.lax.conv_general_dilated(
        x, w, window_strides=(1, 1), padding="SAME",
        dimension_numbers=("NCHW", "OIHW", "NCHW"))
    out = out + b[None, :, None, None]
    if lrelu:
        out = jnp.where(out >= 0.0, out, 0.2 * out)
    return out


def _rdb_ref(x, p):
    x1 = _conv_ref(x, p["w1"], p["b1"], True)
    x2 = _conv_ref(jnp.concatenate([x, x1], 1), p["w2"], p["b2"], True)
    x3 = _conv_ref(jnp.concatenate([x, x1, x2], 1), p["w3"], p["b3"], True)
    x4 = _conv_ref(jnp.concatenate([x, x1, x2, x3], 1), p["w4"], p["b4"], True)
    x5 = _conv_ref(jnp.concatenate([x, x1, x2, x3, x4], 1), p["w5"], p["b5"], False)
    return x5 * 0.2 + x


def _rrdb_ref(x, params):
    out = _rdb_ref(x, params["rdb1"])
    out = _rdb_ref(out, params["rdb2"])
    out = _rdb_ref(out, params["rdb3"])
    return out * 0.2 + x


# ----------------------------- main --------------------------------------------

if __name__ == "__main__":
    B, H, W = 2, 16, 16
    num_feat, num_grow_ch = 8, 8

    key = jax.random.PRNGKey(0)
    kx, kp = jax.random.split(key)
    x = jax.random.normal(kx, (B, num_feat, H, W), jnp.float32)   # NCHW
    params = init_rrdb_params(kp, num_feat, num_grow_ch)

    out = jax.block_until_ready(jax.jit(rrdb_forward)(x, params))
    ref = jax.block_until_ready(jax.jit(_rrdb_ref)(x, params))

    assert out.shape == (B, num_feat, H, W)
    assert jnp.allclose(out, ref, rtol=2e-2, atol=2e-3), "mismatch vs reference"
    print("KERNEL_OK")
</pallas_src>

<mosaic_0001>
module attributes {stable_mosaic.version = 11 : i64} {
  func.func @_rdb_kernel(%arg0: i32, %arg1: memref<1x8x256xf32, #tpu.memory_space<vmem>>, %arg2: memref<9x256xf32, #tpu.memory_space<vmem>>, %arg3: memref<8x360xf32, #tpu.memory_space<vmem>>, %arg4: memref<8x360xf32, #tpu.memory_space<vmem>>, %arg5: memref<8x360xf32, #tpu.memory_space<vmem>>, %arg6: memref<8x360xf32, #tpu.memory_space<vmem>>, %arg7: memref<8x360xf32, #tpu.memory_space<vmem>>, %arg8: memref<8x1xf32, #tpu.memory_space<vmem>>, %arg9: memref<8x1xf32, #tpu.memory_space<vmem>>, %arg10: memref<8x1xf32, #tpu.memory_space<vmem>>, %arg11: memref<8x1xf32, #tpu.memory_space<vmem>>, %arg12: memref<8x1xf32, #tpu.memory_space<vmem>>, %arg13: memref<1x8x256xf32, #tpu.memory_space<vmem>>, %arg14: memref<360x256xf32, #tpu.memory_space<vmem>>) attributes {dimension_semantics = [#tpu.dimension_semantics<parallel>], iteration_bounds = array<i64: 2>, scalar_prefetch = 0 : i64, scratch_operands = 1 : i64, tpu.core_type = #tpu.core_type<tc>, window_params = [{transform_indices = @transform_0, window_bounds = array<i64: 1, 8, 256>}, {pipeline_mode = #tpu.pipeline_mode<synchronous>, transform_indices = @transform_1, window_bounds = array<i64: 9, 256>}, {pipeline_mode = #tpu.pipeline_mode<synchronous>, transform_indices = @transform_2, window_bounds = array<i64: 8, 360>}, {pipeline_mode = #tpu.pipeline_mode<synchronous>, transform_indices = @transform_3, window_bounds = array<i64: 8, 360>}, {pipeline_mode = #tpu.pipeline_mode<synchronous>, transform_indices = @transform_4, window_bounds = array<i64: 8, 360>}, {pipeline_mode = #tpu.pipeline_mode<synchronous>, transform_indices = @transform_5, window_bounds = array<i64: 8, 360>}, {pipeline_mode = #tpu.pipeline_mode<synchronous>, transform_indices = @transform_6, window_bounds = array<i64: 8, 360>}, {pipeline_mode = #tpu.pipeline_mode<synchronous>, transform_indices = @transform_7, window_bounds = array<i64: 8, 1>}, {pipeline_mode = #tpu.pipeline_mode<synchronous>, transform_indices = @transform_8, window_bounds = array<i64: 8, 1>}, {pipeline_mode = #tpu.pipeline_mode<synchronous>, transform_indices = @transform_9, window_bounds = array<i64: 8, 1>}, {pipeline_mode = #tpu.pipeline_mode<synchronous>, transform_indices = @transform_10, window_bounds = array<i64: 8, 1>}, {pipeline_mode = #tpu.pipeline_mode<synchronous>, transform_indices = @transform_11, window_bounds = array<i64: 8, 1>}, {transform_indices = @transform_12, window_bounds = array<i64: 1, 8, 256>}]} {
    %cst = arith.constant 0.000000e+00 : f32
    %0 = vector.broadcast %cst : f32 to vector<360x256xf32>
    %c0 = arith.constant 0 : index
    %c0_0 = arith.constant 0 : index
    %1 = vector.load %arg14[%c0, %c0_0] : memref<360x256xf32, #tpu.memory_space<vmem>>, vector<360x256xf32>
    tpu.vector_store %arg14[%c0, %c0_0], %0 {strides = array<i32>} : memref<360x256xf32, #tpu.memory_space<vmem>>, vector<360x256xf32>,
    %c0_1 = arith.constant 0 : index
    %c0_2 = arith.constant 0 : index
    %2 = vector.load %arg2[%c0_1, %c0_2] : memref<9x256xf32, #tpu.memory_space<vmem>>, vector<9x256xf32>
    %c0_3 = arith.constant 0 : index
    %c0_4 = arith.constant 0 : index
    %c0_5 = arith.constant 0 : index
    %3 = vector.load %arg1[%c0_3, %c0_4, %c0_5] : memref<1x8x256xf32, #tpu.memory_space<vmem>>, vector<1x8x256xf32>
    %4 = vector.shape_cast %3 : vector<1x8x256xf32> to vector<8x256xf32>
    %5 = vector.extract_strided_slice %4 {offsets = [0, 239], sizes = [8, 17], strides = [1, 1]} : vector<8x256xf32> to vector<8x17xf32>
    %6 = vector.extract_strided_slice %4 {offsets = [0, 0], sizes = [8, 239], strides = [1, 1]} : vector<8x256xf32> to vector<8x239xf32>
    %7 = tpu.concatenate %5, %6 in 1 : vector<8x17xf32>, vector<8x239xf32> -> vector<8x256xf32>
    %8 = vector.extract_strided_slice %2 {offsets = [0, 0], sizes = [1, 256], strides = [1, 1]} : vector<9x256xf32> to vector<1x256xf32>
    %9 = vector.broadcast %8 : vector<1x256xf32> to vector<8x256xf32>
    %10 = arith.mulf %7, %9 : vector<8x256xf32>
    %c0_6 = arith.constant 0 : index
    %c0_7 = arith.constant 0 : index
    %11 = vector.load %arg14[%c0_6, %c0_7] : memref<360x256xf32, #tpu.memory_space<vmem>>, vector<8x256xf32>
    tpu.vector_store %arg14[%c0_6, %c0_7], %10 {strides = array<i32>} : memref<360x256xf32, #tpu.memory_space<vmem>>, vector<8x256xf32>,
    %12 = vector.extract_strided_slice %4 {offsets = [0, 240], sizes = [8, 16], strides = [1, 1]} : vector<8x256xf32> to vector<8x16xf32>
    %13 = vector.extract_strided_slice %4 {offsets = [0, 0], sizes = [8, 240], strides = [1, 1]} : vector<8x256xf32> to vector<8x240xf32>
    %14 = tpu.concatenate %12, %13 in 1 : vector<8x16xf32>, vector<8x240xf32> -> vector<8x256xf32>
    %15 = vector.extract_strided_slice %2 {offsets = [1, 0], sizes = [1, 256], strides = [1, 1]} : vector<9x256xf32> to vector<1x256xf32>
    %16 = vector.broadcast %15 : vector<1x256xf32> to vector<8x256xf32>
    %17 = arith.mulf %14, %16 : vector<8x256xf32>
    %c40 = arith.constant 40 : index
    %c0_8 = arith.constant 0 : index
    %18 = vector.load %arg14[%c40, %c0_8] : memref<360x256xf32, #tpu.memory_space<vmem>>, vector<8x256xf32>
    tpu.vector_store %arg14[%c40, %c0_8], %17 {strides = array<i32>} : memref<360x256xf32, #tpu.memory_space<vmem>>, vector<8x256xf32>,
    %19 = vector.extract_strided_slice %4 {offsets = [0, 241], sizes = [8, 15], strides = [1, 1]} : vector<8x256xf32> to vector<8x15xf32>
    %20 = vector.extract_strided_slice %4 {offsets = [0, 0], sizes = [8, 241], strides = [1, 1]} : vector<8x256xf32> to vector<8x241xf32>
    %21 = tpu.concatenate %19, %20 in 1 : vector<8x15xf32>, vector<8x241xf32> -> vector<8x256xf32>
    %22 = vector.extract_strided_slice %2 {offsets = [2, 0], sizes = [1, 256], strides = [1, 1]} : vector<9x256xf32> to vector<1x256xf32>
    %23 = vector.broadcast %22 : vector<1x256xf32> to vector<8x256xf32>
    %24 = arith.mulf %21, %23 : vector<8x256xf32>
    %c80 = arith.constant 80 : index
    %c0_9 = arith.constant 0 : index
    %25 = vector.load %arg14[%c80, %c0_9] : memref<360x256xf32, #tpu.memory_space<vmem>>, vector<8x256xf32>
    tpu.vector_store %arg14[%c80, %c0_9], %24 {strides = array<i32>} : memref<360x256xf32, #tpu.memory_space<vmem>>, vector<8x256xf32>,
    %26 = vector.extract_strided_slice %4 {offsets = [0, 255], sizes = [8, 1], strides = [1, 1]} : vector<8x256xf32> to vector<8x1xf32>
    %27 = vector.extract_strided_slice %4 {offsets = [0, 0], sizes = [8, 255], strides = [1, 1]} : vector<8x256xf32> to vector<8x255xf32>
    %28 = tpu.concatenate %26, %27 in 1 : vector<8x1xf32>, vector<8x255xf32> -> vector<8x256xf32>
    %29 = vector.extract_strided_slice %2 {offsets = [3, 0], sizes = [1, 256], strides = [1, 1]} : vector<9x256xf32> to vector<1x256xf32>
    %30 = vector.broadcast %29 : vector<1x256xf32> to vector<8x256xf32>
    %31 = arith.mulf %28, %30 : vector<8x256xf32>
    %c120 = arith.constant 120 : index
    %c0_10 = arith.constant 0 : index
    %32 = vector.load %arg14[%c120, %c0_10] : memref<360x256xf32, #tpu.memory_space<vmem>>, vector<8x256xf32>
    tpu.vector_store %arg14[%c120, %c0_10], %31 {strides = array<i32>} : memref<360x256xf32, #tpu.memory_space<vmem>>, vector<8x256xf32>,
    %33 = vector.extract_strided_slice %2 {offsets = [4, 0], sizes = [1, 256], strides = [1, 1]} : vector<9x256xf32> to vector<1x256xf32>
    %34 = vector.broadcast %33 : vector<1x256xf32> to vector<8x256xf32>
    %35 = arith.mulf %4, %34 : vector<8x256xf32>
    %c160 = arith.constant 160 : index
    %c0_11 = arith.constant 0 : index
    %36 = vector.load %arg14[%c160, %c0_11] : memref<360x256xf32, #tpu.memory_space<vmem>>, vector<8x256xf32>
    tpu.vector_store %arg14[%c160, %c0_11], %35 {strides = array<i32>} : memref<360x256xf32, #tpu.memory_space<vmem>>, vector<8x256xf32>,
    %37 = vector.extract_strided_slice %4 {offsets = [0, 1], sizes = [8, 255], strides = [1, 1]} : vector<8x256xf32> to vector<8x255xf32>
    %38 = vector.extract_strided_slice %4 {offsets = [0, 0], sizes = [8, 1], strides = [1, 1]} : vector<8x256xf32> to vector<8x1xf32>
    %39 = tpu.concatenate %37, %38 in 1 : vector<8x255xf32>, vector<8x1xf32> -> vector<8x256xf32>
    %40 = vector.extract_strided_slice %2 {offsets = [5, 0], sizes = [1, 256], strides = [1, 1]} : vector<9x256xf32> to vector<1x256xf32>
    %41 = vector.broadcast %40 : vector<1x256xf32> to vector<8x256xf32>
    %42 = arith.mulf %39, %41 : vector<8x256xf32>
    %c200 = arith.constant 200 : index
    %c0_12 = arith.constant 0 : index
    %43 = vector.load %arg14[%c200, %c0_12] : memref<360x256xf32, #tpu.memory_space<vmem>>, vector<8x256xf32>
    tpu.vector_store %arg14[%c200, %c0_12], %42 {strides = array<i32>} : memref<360x256xf32, #tpu.memory_space<vmem>>, vector<8x256xf32>,
    %44 = vector.extract_strided_slice %4 {offsets = [0, 15], sizes = [8, 241], strides = [1, 1]} : vector<8x256xf32> to vector<8x241xf32>
    %45 = vector.extract_strided_slice %4 {offsets = [0, 0], sizes = [8, 15], strides = [1, 1]} : vector<8x256xf32> to vector<8x15xf32>
    %46 = tpu.concatenate %44, %45 in 1 : vector<8x241xf32>, vector<8x15xf32> -> vector<8x256xf32>
    %47 = vector.extract_strided_slice %2 {offsets = [6, 0], sizes = [1, 256], strides = [1, 1]} : vector<9x256xf32> to vector<1x256xf32>
    %48 = vector.broadcast %47 : vector<1x256xf32> to vector<8x256xf32>
    %49 = arith.mulf %46, %48 : vector<8x256xf32>
    %c240 = arith.constant 240 : index
    %c0_13 = arith.constant 0 : index
    %50 = vector.load %arg14[%c240, %c0_13] : memref<360x256xf32, #tpu.memory_space<vmem>>, vector<8x256xf32>
    tpu.vector_store %arg14[%c240, %c0_13], %49 {strides = array<i32>} : memref<360x256xf32, #tpu.memory_space<vmem>>, vector<8x256xf32>,
    %51 = vector.extract_strided_slice %4 {offsets = [0, 16], sizes = [8, 240], strides = [1, 1]} : vector<8x256xf32> to vector<8x240xf32>
    %52 = vector.extract_strided_slice %4 {offsets = [0, 0], sizes = [8, 16], strides = [1, 1]} : vector<8x256xf32> to vector<8x16xf32>
    %53 = tpu.concatenate %51, %52 in 1 : vector<8x240xf32>, vector<8x16xf32> -> vector<8x256xf32>
    %54 = vector.extract_strided_slice %2 {offsets = [7, 0], sizes = [1, 256], strides = [1, 1]} : vector<9x256xf32> to vector<1x256xf32>
    %55 = vector.broadcast %54 : vector<1x256xf32> to vector<8x256xf32>
    %56 = arith.mulf %53, %55 : vector<8x256xf32>
    %c280 = arith.constant 280 : index
    %c0_14 = arith.constant 0 : index
    %57 = vector.load %arg14[%c280, %c0_14] : memref<360x256xf32, #tpu.memory_space<vmem>>, vector<8x256xf32>
    tpu.vector_store %arg14[%c280, %c0_14], %56 {strides = array<i32>} : memref<360x256xf32, #tpu.memory_space<vmem>>, vector<8x256xf32>,
    %58 = vector.extract_strided_slice %4 {offsets = [0, 17], sizes = [8, 239], strides = [1, 1]} : vector<8x256xf32> to vector<8x239xf32>
    %59 = vector.extract_strided_slice %4 {offsets = [0, 0], sizes = [8, 17], strides = [1, 1]} : vector<8x256xf32> to vector<8x17xf32>
    %60 = tpu.concatenate %58, %59 in 1 : vector<8x239xf32>, vector<8x17xf32> -> vector<8x256xf32>
    %61 = vector.extract_strided_slice %2 {offsets = [8, 0], sizes = [1, 256], strides = [1, 1]} : vector<9x256xf32> to vector<1x256xf32>
    %62 = vector.broadcast %61 : vector<1x256xf32> to vector<8x256xf32>
    %63 = arith.mulf %60, %62 : vector<8x256xf32>
    %c320 = arith.constant 320 : index
    %c0_15 = arith.constant 0 : index
    %64 = vector.load %arg14[%c320, %c0_15] : memref<360x256xf32, #tpu.memory_space<vmem>>, vector<8x256xf32>
    tpu.vector_store %arg14[%c320, %c0_15], %63 {strides = array<i32>} : memref<360x256xf32, #tpu.memory_space<vmem>>, vector<8x256xf32>,
    %c0_16 = arith.constant 0 : index
    %c0_17 = arith.constant 0 : index
    %65 = vector.load %arg3[%c0_16, %c0_17] : memref<8x360xf32, #tpu.memory_space<vmem>>, vector<8x360xf32>
    %c0_18 = arith.constant 0 : index
    %c0_19 = arith.constant 0 : index
    %66 = vector.load %arg14[%c0_18, %c0_19] : memref<360x256xf32, #tpu.memory_space<vmem>>, vector<360x256xf32>
    %cst_20 = arith.constant dense<0.000000e+00> : vector<8x256xf32>
    %67 = tpu.matmul %65, %66, %cst_20 {dimension_numbers = #tpu.dot_dimension_numbers<[1], [0], [0], [1], [0, 0, 1, 1], [], []>} : vector<8x360xf32>, vector<360x256xf32>, vector<8x256xf32> -> vector<8x256xf32>
    %c0_21 = arith.constant 0 : index
    %c0_22 = arith.constant 0 : index
    %68 = vector.load %arg8[%c0_21, %c0_22] : memref<8x1xf32, #tpu.memory_space<vmem>>, vector<8x1xf32>
    %69 = vector.broadcast %68 : vector<8x1xf32> to vector<8x256xf32>
    %70 = arith.addf %67, %69 : vector<8x256xf32>
    %cst_23 = arith.constant 0.000000e+00 : f32
    %71 = vector.broadcast %cst_23 : f32 to vector<8x256xf32>
    %72 = arith.cmpf oge, %70, %71 : vector<8x256xf32>
    %cst_24 = arith.constant 2.000000e-01 : f32
    %73 = vector.broadcast %cst_24 : f32 to vector<8x256xf32>
    %74 = arith.mulf %73, %70 : vector<8x256xf32>
    %75 = arith.select %72, %70, %74 : vector<8x256xi1>, vector<8x256xf32>
    %76 = vector.extract_strided_slice %75 {offsets = [0, 239], sizes = [8, 17], strides = [1, 1]} : vector<8x256xf32> to vector<8x17xf32>
    %77 = vector.extract_strided_slice %75 {offsets = [0, 0], sizes = [8, 239], strides = [1, 1]} : vector<8x256xf32> to vector<8x239xf32>
    %78 = tpu.concatenate %76, %77 in 1 : vector<8x17xf32>, vector<8x239xf32> -> vector<8x256xf32>
    %79 = vector.extract_strided_slice %2 {offsets = [0, 0], sizes = [1, 256], strides = [1, 1]} : vector<9x256xf32> to vector<1x256xf32>
    %80 = vector.broadcast %79 : vector<1x256xf32> to vector<8x256xf32>
    %81 = arith.mulf %78, %80 : vector<8x256xf32>
    %c8 = arith.constant 8 : index
    %c0_25 = arith.constant 0 : index
    %82 = vector.load %arg14[%c8, %c0_25] : memref<360x256xf32, #tpu.memory_space<vmem>>, vector<8x256xf32>
    tpu.vector_store %arg14[%c8, %c0_25], %81 {strides = array<i32>} : memref<360x256xf32, #tpu.memory_space<vmem>>, vector<8x256xf32>,
    %83 = vector.extract_strided_slice %75 {offsets = [0, 240], sizes = [8, 16], strides = [1, 1]} : vector<8x256xf32> to vector<8x16xf32>
    %84 = vector.extract_strided_slice %75 {offsets = [0, 0], sizes = [8, 240], strides = [1, 1]} : vector<8x256xf32> to vector<8x240xf32>
    %85 = tpu.concatenate %83, %84 in 1 : vector<8x16xf32>, vector<8x240xf32> -> vector<8x256xf32>
    %86 = vector.extract_strided_slice %2 {offsets = [1, 0], sizes = [1, 256], strides = [1, 1]} : vector<9x256xf32> to vector<1x256xf32>
    %87 = vector.broadcast %86 : vector<1x256xf32> to vector<8x256xf32>
    %88 = arith.mulf %85, %87 : vector<8x256xf32>
    %c48 = arith.constant 48 : index
    %c0_26 = arith.constant 0 : index
    %89 = vector.load %arg14[%c48, %c0_26] : memref<360x256xf32, #tpu.memory_space<vmem>>, vector<8x256xf32>
    tpu.vector_store %arg14[%c48, %c0_26], %88 {strides = array<i32>} : memref<360x256xf32, #tpu.memory_space<vmem>>, vector<8x256xf32>,
    %90 = vector.extract_strided_slice %75 {offsets = [0, 241], sizes = [8, 15], strides = [1, 1]} : vector<8x256xf32> to vector<8x15xf32>
    %91 = vector.extract_strided_slice %75 {offsets = [0, 0], sizes = [8, 241], strides = [1, 1]} : vector<8x256xf32> to vector<8x241xf32>
    %92 = tpu.concatenate %90, %91 in 1 : vector<8x15xf32>, vector<8x241xf32> -> vector<8x256xf32>
    %93 = vector.extract_strided_slice %2 {offsets = [2, 0], sizes = [1, 256], strides = [1, 1]} : vector<9x256xf32> to vector<1x256xf32>
    %94 = vector.broadcast %93 : vector<1x256xf32> to vector<8x256xf32>
    %95 = arith.mulf %92, %94 : vector<8x256xf32>
    %c88 = arith.constant 88 : index
    %c0_27 = arith.constant 0 : index
    %96 = vector.load %arg14[%c88, %c0_27] : memref<360x256xf32, #tpu.memory_space<vmem>>, vector<8x256xf32>
    tpu.vector_store %arg14[%c88, %c0_27], %95 {strides = array<i32>} : memref<360x256xf32, #tpu.memory_space<vmem>>, vector<8x256xf32>,
    %97 = vector.extract_strided_slice %75 {offsets = [0, 255], sizes = [8, 1], strides = [1, 1]} : vector<8x256xf32> to vector<8x1xf32>
    %98 = vector.extract_strided_slice %75 {offsets = [0, 0], sizes = [8, 255], strides = [1, 1]} : vector<8x256xf32> to vector<8x255xf32>
    %99 = tpu.concatenate %97, %98 in 1 : vector<8x1xf32>, vector<8x255xf32> -> vector<8x256xf32>
    %100 = vector.extract_strided_slice %2 {offsets = [3, 0], sizes = [1, 256], strides = [1, 1]} : vector<9x256xf32> to vector<1x256xf32>
    %101 = vector.broadcast %100 : vector<1x256xf32> to vector<8x256xf32>
    %102 = arith.mulf %99, %101 : vector<8x256xf32>
    %c128 = arith.constant 128 : index
    %c0_28 = arith.constant 0 : index
    %103 = vector.load %arg14[%c128, %c0_28] : memref<360x256xf32, #tpu.memory_space<vmem>>, vector<8x256xf32>
    tpu.vector_store %arg14[%c128, %c0_28], %102 {strides = array<i32>} : memref<360x256xf32, #tpu.memory_space<vmem>>, vector<8x256xf32>,
    %104 = vector.extract_strided_slice %2 {offsets = [4, 0], sizes = [1, 256], strides = [1, 1]} : vector<9x256xf32> to vector<1x256xf32>
    %105 = vector.broadcast %104 : vector<1x256xf32> to vector<8x256xf32>
    %106 = arith.mulf %75, %105 : vector<8x256xf32>
    %c168 = arith.constant 168 : index
    %c0_29 = arith.constant 0 : index
    %107 = vector.load %arg14[%c168, %c0_29] : memref<360x256xf32, #tpu.memory_space<vmem>>, vector<8x256xf32>
    tpu.vector_store %arg14[%c168, %c0_29], %106 {strides = array<i32>} : memref<360x256xf32, #tpu.memory_space<vmem>>, vector<8x256xf32>,
    %108 = vector.extract_strided_slice %75 {offsets = [0, 1], sizes = [8, 255], strides = [1, 1]} : vector<8x256xf32> to vector<8x255xf32>
    %109 = vector.extract_strided_slice %75 {offsets = [0, 0], sizes = [8, 1], strides = [1, 1]} : vector<8x256xf32> to vector<8x1xf32>
    %110 = tpu.concatenate %108, %109 in 1 : vector<8x255xf32>, vector<8x1xf32> -> vector<8x256xf32>
    %111 = vector.extract_strided_slice %2 {offsets = [5, 0], sizes = [1, 256], strides = [1, 1]} : vector<9x256xf32> to vector<1x256xf32>
    %112 = vector.broadcast %111 : vector<1x256xf32> to vector<8x256xf32>
    %113 = arith.mulf %110, %112 : vector<8x256xf32>
    %c208 = arith.constant 208 : index
    %c0_30 = arith.constant 0 : index
    %114 = vector.load %arg14[%c208, %c0_30] : memref<360x256xf32, #tpu.memory_space<vmem>>, vector<8x256xf32>
    tpu.vector_store %arg14[%c208, %c0_30], %113 {strides = array<i32>} : memref<360x256xf32, #tpu.memory_space<vmem>>, vector<8x256xf32>,
    %115 = vector.extract_strided_slice %75 {offsets = [0, 15], sizes = [8, 241], strides = [1, 1]} : vector<8x256xf32> to vector<8x241xf32>
    %116 = vector.extract_strided_slice %75 {offsets = [0, 0], sizes = [8, 15], strides = [1, 1]} : vector<8x256xf32> to vector<8x15xf32>
    %117 = tpu.concatenate %115, %116 in 1 : vector<8x241xf32>, vector<8x15xf32> -> vector<8x256xf32>
    %118 = vector.extract_strided_slice %2 {offsets = [6, 0], sizes = [1, 256], strides = [1, 1]} : vector<9x256xf32> to vector<1x256xf32>
    %119 = vector.broadcast %118 : vector<1x256xf32> to vector<8x256xf32>
    %120 = arith.mulf %117, %119 : vector<8x256xf32>
    %c248 = arith.constant 248 : index
    %c0_31 = arith.constant 0 : index
    %121 = vector.load %arg14[%c248, %c0_31] : memref<360x256xf32, #tpu.memory_space<vmem>>, vector<8x256xf32>
    tpu.vector_store %arg14[%c248, %c0_31], %120 {strides = array<i32>} : memref<360x256xf32, #tpu.memory_space<vmem>>, vector<8x256xf32>,
    %122 = vector.extract_strided_slice %75 {offsets = [0, 16], sizes = [8, 240], strides = [1, 1]} : vector<8x256xf32> to vector<8x240xf32>
    %123 = vector.extract_strided_slice %75 {offsets = [0, 0], sizes = [8, 16], strides = [1, 1]} : vector<8x256xf32> to vector<8x16xf32>
    %124 = tpu.concatenate %122, %123 in 1 : vector<8x240xf32>, vector<8x16xf32> -> vector<8x256xf32>
    %125 = vector.extract_strided_slice %2 {offsets = [7, 0], sizes = [1, 256], strides = [1, 1]} : vector<9x256xf32> to vector<1x256xf32>
    %126 = vector.broadcast %125 : vector<1x256xf32> to vector<8x256xf32>
    %127 = arith.mulf %124, %126 : vector<8x256xf32>
    %c288 = arith.constant 288 : index
    %c0_32 = arith.constant 0 : index
    %128 = vector.load %arg14[%c288, %c0_32] : memref<360x256xf32, #tpu.memory_space<vmem>>, vector<8x256xf32>
    tpu.vector_store %arg14[%c288, %c0_32], %127 {strides = array<i32>} : memref<360x256xf32, #tpu.memory_space<vmem>>, vector<8x256xf32>,
    %129 = vector.extract_strided_slice %75 {offsets = [0, 17], sizes = [8, 239], strides = [1, 1]} : vector<8x256xf32> to vector<8x239xf32>
    %130 = vector.extract_strided_slice %75 {offsets = [0, 0], sizes = [8, 17], strides = [1, 1]} : vector<8x256xf32> to vector<8x17xf32>
    %131 = tpu.concatenate %129, %130 in 1 : vector<8x239xf32>, vector<8x17xf32> -> vector<8x256xf32>
    %132 = vector.extract_strided_slice %2 {offsets = [8, 0], sizes = [1, 256], strides = [1, 1]} : vector<9x256xf32> to vector<1x256xf32>
    %133 = vector.broadcast %132 : vector<1x256xf32> to vector<8x256xf32>
    %134 = arith.mulf %131, %133 : vector<8x256xf32>
    %c328 = arith.constant 328 : index
    %c0_33 = arith.constant 0 : index
    %135 = vector.load %arg14[%c328, %c0_33] : memref<360x256xf32, #tpu.memory_space<vmem>>, vector<8x256xf32>
    tpu.vector_store %arg14[%c328, %c0_33], %134 {strides = array<i32>} : memref<360x256xf32, #tpu.memory_space<vmem>>, vector<8x256xf32>,
    %c0_34 = arith.constant 0 : index
    %c0_35 = arith.constant 0 : index
    %136 = vector.load %arg4[%c0_34, %c0_35] : memref<8x360xf32, #tpu.memory_space<vmem>>, vector<8x360xf32>
    %c0_36 = arith.constant 0 : index
    %c0_37 = arith.constant 0 : index
    %137 = vector.load %arg14[%c0_36, %c0_37] : memref<360x256xf32, #tpu.memory_space<vmem>>, vector<360x256xf32>
    %cst_38 = arith.constant dense<0.000000e+00> : vector<8x256xf32>
    %138 = tpu.matmul %136, %137, %cst_38 {dimension_numbers = #tpu.dot_dimension_numbers<[1], [0], [0], [1], [0, 0, 1, 1], [], []>} : vector<8x360xf32>, vector<360x256xf32>, vector<8x256xf32> -> vector<8x256xf32>
    %c0_39 = arith.constant 0 : index
    %c0_40 = arith.constant 0 : index
    %139 = vector.load %arg9[%c0_39, %c0_40] : memref<8x1xf32, #tpu.memory_space<vmem>>, vector<8x1xf32>
    %140 = vector.broadcast %139 : vector<8x1xf32> to vector<8x256xf32>
    %141 = arith.addf %138, %140 : vector<8x256xf32>
    %cst_41 = arith.constant 0.000000e+00 : f32
    %142 = vector.broadcast %cst_41 : f32 to vector<8x256xf32>
    %143 = arith.cmpf oge, %141, %142 : vector<8x256xf32>
    %cst_42 = arith.constant 2.000000e-01 : f32
    %144 = vector.broadcast %cst_42 : f32 to vector<8x256xf32>
    %145 = arith.mulf %144, %141 : vector<8x256xf32>
    %146 = arith.select %143, %141, %145 : vector<8x256xi1>, vector<8x256xf32>
    %147 = vector.extract_strided_slice %146 {offsets = [0, 239], sizes = [8, 17], strides = [1, 1]} : vector<8x256xf32> to vector<8x17xf32>
    %148 = vector.extract_strided_slice %146 {offsets = [0, 0], sizes = [8, 239], strides = [1, 1]} : vector<8x256xf32> to vector<8x239xf32>
    %149 = tpu.concatenate %147, %148 in 1 : vector<8x17xf32>, vector<8x239xf32> -> vector<8x256xf32>
    %150 = vector.extract_strided_slice %2 {offsets = [0, 0], sizes = [1, 256], strides = [1, 1]} : vector<9x256xf32> to vector<1x256xf32>
    %151 = vector.broadcast %150 : vector<1x256xf32> to vector<8x256xf32>
    %152 = arith.mulf %149, %151 : vector<8x256xf32>
    %c16 = arith.constant 16 : index
    %c0_43 = arith.constant 0 : index
    %153 = vector.load %arg14[%c16, %c0_43] : memref<360x256xf32, #tpu.memory_space<vmem>>, vector<8x256xf32>
    tpu.vector_store %arg14[%c16, %c0_43], %152 {strides = array<i32>} : memref<360x256xf32, #tpu.memory_space<vmem>>, vector<8x256xf32>,
    %154 = vector.extract_strided_slice %146 {offsets = [0, 240], sizes = [8, 16], strides = [1, 1]} : vector<8x256xf32> to vector<8x16xf32>
    %155 = vector.extract_strided_slice %146 {offsets = [0, 0], sizes = [8, 240], strides = [1, 1]} : vector<8x256xf32> to vector<8x240xf32>
    %156 = tpu.concatenate %154, %155 in 1 : vector<8x16xf32>, vector<8x240xf32> -> vector<8x256xf32>
    %157 = vector.extract_strided_slice %2 {offsets = [1, 0], sizes = [1, 256], strides = [1, 1]} : vector<9x256xf32> to vector<1x256xf32>
    %158 = vector.broadcast %157 : vector<1x256xf32> to vector<8x256xf32>
    %159 = arith.mulf %156, %158 : vector<8x256xf32>
    %c56 = arith.constant 56 : index
    %c0_44 = arith.constant 0 : index
    %160 = vector.load %arg14[%c56, %c0_44] : memref<360x256xf32, #tpu.memory_space<vmem>>, vector<8x256xf32>
    tpu.vector_store %arg14[%c56, %c0_44], %159 {strides = array<i32>} : memref<360x256xf32, #tpu.memory_space<vmem>>, vector<8x256xf32>,
    %161 = vector.extract_strided_slice %146 {offsets = [0, 241], sizes = [8, 15], strides = [1, 1]} : vector<8x256xf32> to vector<8x15xf32>
    %162 = vector.extract_strided_slice %146 {offsets = [0, 0], sizes = [8, 241], strides = [1, 1]} : vector<8x256xf32> to vector<8x241xf32>
    %163 = tpu.concatenate %161, %162 in 1 : vector<8x15xf32>, vector<8x241xf32> -> vector<8x256xf32>
    %164 = vector.extract_strided_slice %2 {offsets = [2, 0], sizes = [1, 256], strides = [1, 1]} : vector<9x256xf32> to vector<1x256xf32>
    %165 = vector.broadcast %164 : vector<1x256xf32> to vector<8x256xf32>
    %166 = arith.mulf %163, %165 : vector<8x256xf32>
    %c96 = arith.constant 96 : index
    %c0_45 = arith.constant 0 : index
    %167 = vector.load %arg14[%c96, %c0_45] : memref<360x256xf32, #tpu.memory_space<vmem>>, vector<8x256xf32>
    tpu.vector_store %arg14[%c96, %c0_45], %166 {strides = array<i32>} : memref<360x256xf32, #tpu.memory_space<vmem>>, vector<8x256xf32>,
    %168 = vector.extract_strided_slice %146 {offsets = [0, 255], sizes = [8, 1], strides = [1, 1]} : vector<8x256xf32> to vector<8x1xf32>
    %169 = vector.extract_strided_slice %146 {offsets = [0, 0], sizes = [8, 255], strides = [1, 1]} : vector<8x256xf32> to vector<8x255xf32>
    %170 = tpu.concatenate %168, %169 in 1 : vector<8x1xf32>, vector<8x255xf32> -> vector<8x256xf32>
    %171 = vector.extract_strided_slice %2 {offsets = [3, 0], sizes = [1, 256], strides = [1, 1]} : vector<9x256xf32> to vector<1x256xf32>
    %172 = vector.broadcast %171 : vector<1x256xf32> to vector<8x256xf32>
    %173 = arith.mulf %170, %172 : vector<8x256xf32>
    %c136 = arith.constant 136 : index
    %c0_46 = arith.constant 0 : index
    %174 = vector.load %arg14[%c136, %c0_46] : memref<360x256xf32, #tpu.memory_space<vmem>>, vector<8x256xf32>
    tpu.vector_store %arg14[%c136, %c0_46], %173 {strides = array<i32>} : memref<360x256xf32, #tpu.memory_space<vmem>>, vector<8x256xf32>,
    %175 = vector.extract_strided_slice %2 {offsets = [4, 0], sizes = [1, 256], strides = [1, 1]} : vector<9x256xf32> to vector<1x256xf32>
    %176 = vector.broadcast %175 : vector<1x256xf32> to vector<8x256xf32>
    %177 = arith.mulf %146, %176 : vector<8x256xf32>
    %c176 = arith.constant 176 : index
    %c0_47 = arith.constant 0 : index
    %178 = vector.load %arg14[%c176, %c0_47] : memref<360x256xf32, #tpu.memory_space<vmem>>, vector<8x256xf32>
    tpu.vector_store %arg14[%c176, %c0_47], %177 {strides = array<i32>} : memref<360x256xf32, #tpu.memory_space<vmem>>, vector<8x256xf32>,
    %179 = vector.extract_strided_slice %146 {offsets = [0, 1], sizes = [8, 255], strides = [1, 1]} : vector<8x256xf32> to vector<8x255xf32>
    %180 = vector.extract_strided_slice %146 {offsets = [0, 0], sizes = [8, 1], strides = [1, 1]} : vector<8x256xf32> to vector<8x1xf32>
    %181 = tpu.concatenate %179, %180 in 1 : vector<8x255xf32>, vector<8x1xf32> -> vector<8x256xf32>
    %182 = vector.extract_strided_slice %2 {offsets = [5, 0], sizes = [1, 256], strides = [1, 1]} : vector<9x256xf32> to vector<1x256xf32>
    %183 = vector.broadcast %182 : vector<1x256xf32> to vector<8x256xf32>
    %184 = arith.mulf %181, %183 : vector<8x256xf32>
    %c216 = arith.constant 216 : index
    %c0_48 = arith.constant 0 : index
    %185 = vector.load %arg14[%c216, %c0_48] : memref<360x256xf32, #tpu.memory_space<vmem>>, vector<8x256xf32>
    tpu.vector_store %arg14[%c216, %c0_48], %184 {strides = array<i32>} : memref<360x256xf32, #tpu.memory_space<vmem>>, vector<8x256xf32>,
    %186 = vector.extract_strided_slice %146 {offsets = [0, 15], sizes = [8, 241], strides = [1, 1]} : vector<8x256xf32> to vector<8x241xf32>
    %187 = vector.extract_strided_slice %146 {offsets = [0, 0], sizes = [8, 15], strides = [1, 1]} : vector<8x256xf32> to vector<8x15xf32>
    %188 = tpu.concatenate %186, %187 in 1 : vector<8x241xf32>, vector<8x15xf32> -> vector<8x256xf32>
    %189 = vector.extract_strided_slice %2 {offsets = [6, 0], sizes = [1, 256], strides = [1, 1]} : vector<9x256xf32> to vector<1x256xf32>
    %190 = vector.broadcast %189 : vector<1x256xf32> to vector<8x256xf32>
    %191 = arith.mulf %188, %190 : vector<8x256xf32>
    %c256 = arith.constant 256 : index
    %c0_49 = arith.constant 0 : index
    %192 = vector.load %arg14[%c256, %c0_49] : memref<360x256xf32, #tpu.memory_space<vmem>>, vector<8x256xf32>
    tpu.vector_store %arg14[%c256, %c0_49], %191 {strides = array<i32>} : memref<360x256xf32, #tpu.memory_space<vmem>>, vector<8x256xf32>,
    %193 = vector.extract_strided_slice %146 {offsets = [0, 16], sizes = [8, 240], strides = [1, 1]} : vector<8x256xf32> to vector<8x240xf32>
    %194 = vector.extract_strided_slice %146 {offsets = [0, 0], sizes = [8, 16], strides = [1, 1]} : vector<8x256xf32> to vector<8x16xf32>
    %195 = tpu.concatenate %193, %194 in 1 : vector<8x240xf32>, vector<8x16xf32> -> vector<8x256xf32>
    %196 = vector.extract_strided_slice %2 {offsets = [7, 0], sizes = [1, 256], strides = [1, 1]} : vector<9x256xf32> to vector<1x256xf32>
    %197 = vector.broadcast %196 : vector<1x256xf32> to vector<8x256xf32>
    %198 = arith.mulf %195, %197 : vector<8x256xf32>
    %c296 = arith.constant 296 : index
    %c0_50 = arith.constant 0 : index
    %199 = vector.load %arg14[%c296, %c0_50] : memref<360x256xf32, #tpu.memory_space<vmem>>, vector<8x256xf32>
    tpu.vector_store %arg14[%c296, %c0_50], %198 {strides = array<i32>} : memref<360x256xf32, #tpu.memory_space<vmem>>, vector<8x256xf32>,
    %200 = vector.extract_strided_slice %146 {offsets = [0, 17], sizes = [8, 239], strides = [1, 1]} : vector<8x256xf32> to vector<8x239xf32>
    %201 = vector.extract_strided_slice %146 {offsets = [0, 0], sizes = [8, 17], strides = [1, 1]} : vector<8x256xf32> to vector<8x17xf32>
    %202 = tpu.concatenate %200, %201 in 1 : vector<8x239xf32>, vector<8x17xf32> -> vector<8x256xf32>
    %203 = vector.extract_strided_slice %2 {offsets = [8, 0], sizes = [1, 256], strides = [1, 1]} : vector<9x256xf32> to vector<1x256xf32>
    %204 = vector.broadcast %203 : vector<1x256xf32> to vector<8x256xf32>
    %205 = arith.mulf %202, %204 : vector<8x256xf32>
    %c336 = arith.constant 336 : index
    %c0_51 = arith.constant 0 : index
    %206 = vector.load %arg14[%c336, %c0_51] : memref<360x256xf32, #tpu.memory_space<vmem>>, vector<8x256xf32>
    tpu.vector_store %arg14[%c336, %c0_51], %205 {strides = array<i32>} : memref<360x256xf32, #tpu.memory_space<vmem>>, vector<8x256xf32>,
    %c0_52 = arith.constant 0 : index
    %c0_53 = arith.constant 0 : index
    %207 = vector.load %arg5[%c0_52, %c0_53] : memref<8x360xf32, #tpu.memory_space<vmem>>, vector<8x360xf32>
    %c0_54 = arith.constant 0 : index
    %c0_55 = arith.constant 0 : index
    %208 = vector.load %arg14[%c0_54, %c0_55] : memref<360x256xf32, #tpu.memory_space<vmem>>, vector<360x256xf32>
    %cst_56 = arith.constant dense<0.000000e+00> : vector<8x256xf32>
    %209 = tpu.matmul %207, %208, %cst_56 {dimension_numbers = #tpu.dot_dimension_numbers<[1], [0], [0], [1], [0, 0, 1, 1], [], []>} : vector<8x360xf32>, vector<360x256xf32>, vector<8x256xf32> -> vector<8x256xf32>
    %c0_57 = arith.constant 0 : index
    %c0_58 = arith.constant 0 : index
    %210 = vector.load %arg10[%c0_57, %c0_58] : memref<8x1xf32, #tpu.memory_space<vmem>>, vector<8x1xf32>
    %211 = vector.broadcast %210 : vector<8x1xf32> to vector<8x256xf32>
    %212 = arith.addf %209, %211 : vector<8x256xf32>
    %cst_59 = arith.constant 0.000000e+00 : f32
    %213 = vector.broadcast %cst_59 : f32 to vector<8x256xf32>
    %214 = arith.cmpf oge, %212, %213 : vector<8x256xf32>
    %cst_60 = arith.constant 2.000000e-01 : f32
    %215 = vector.broadcast %cst_60 : f32 to vector<8x256xf32>
    %216 = arith.mulf %215, %212 : vector<8x256xf32>
    %217 = arith.select %214, %212, %216 : vector<8x256xi1>, vector<8x256xf32>
    %218 = vector.extract_strided_slice %217 {offsets = [0, 239], sizes = [8, 17], strides = [1, 1]} : vector<8x256xf32> to vector<8x17xf32>
    %219 = vector.extract_strided_slice %217 {offsets = [0, 0], sizes = [8, 239], strides = [1, 1]} : vector<8x256xf32> to vector<8x239xf32>
    %220 = tpu.concatenate %218, %219 in 1 : vector<8x17xf32>, vector<8x239xf32> -> vector<8x256xf32>
    %221 = vector.extract_strided_slice %2 {offsets = [0, 0], sizes = [1, 256], strides = [1, 1]} : vector<9x256xf32> to vector<1x256xf32>
    %222 = vector.broadcast %221 : vector<1x256xf32> to vector<8x256xf32>
    %223 = arith.mulf %220, %222 : vector<8x256xf32>
    %c24 = arith.constant 24 : index
    %c0_61 = arith.constant 0 : index
    %224 = vector.load %arg14[%c24, %c0_61] : memref<360x256xf32, #tpu.memory_space<vmem>>, vector<8x256xf32>
    tpu.vector_store %arg14[%c24, %c0_61], %223 {strides = array<i32>} : memref<360x256xf32, #tpu.memory_space<vmem>>, vector<8x256xf32>,
    %225 = vector.extract_strided_slice %217 {offsets = [0, 240], sizes = [8, 16], strides = [1, 1]} : vector<8x256xf32> to vector<8x16xf32>
    %226 = vector.extract_strided_slice %217 {offsets = [0, 0], sizes = [8, 240], strides = [1, 1]} : vector<8x256xf32> to vector<8x240xf32>
    %227 = tpu.concatenate %225, %226 in 1 : vector<8x16xf32>, vector<8x240xf32> -> vector<8x256xf32>
    %228 = vector.extract_strided_slice %2 {offsets = [1, 0], sizes = [1, 256], strides = [1, 1]} : vector<9x256xf32> to vector<1x256xf32>
    %229 = vector.broadcast %228 : vector<1x256xf32> to vector<8x256xf32>
    %230 = arith.mulf %227, %229 : vector<8x256xf32>
    %c64 = arith.constant 64 : index
    %c0_62 = arith.constant 0 : index
    %231 = vector.load %arg14[%c64, %c0_62] : memref<360x256xf32, #tpu.memory_space<vmem>>, vector<8x256xf32>
    tpu.vector_store %arg14[%c64, %c0_62], %230 {strides = array<i32>} : memref<360x256xf32, #tpu.memory_space<vmem>>, vector<8x256xf32>,
    %232 = vector.extract_strided_slice %217 {offsets = [0, 241], sizes = [8, 15], strides = [1, 1]} : vector<8x256xf32> to vector<8x15xf32>
    %233 = vector.extract_strided_slice %217 {offsets = [0, 0], sizes = [8, 241], strides = [1, 1]} : vector<8x256xf32> to vector<8x241xf32>
    %234 = tpu.concatenate %232, %233 in 1 : vector<8x15xf32>, vector<8x241xf32> -> vector<8x256xf32>
    %235 = vector.extract_strided_slice %2 {offsets = [2, 0], sizes = [1, 256], strides = [1, 1]} : vector<9x256xf32> to vector<1x256xf32>
    %236 = vector.broadcast %235 : vector<1x256xf32> to vector<8x256xf32>
    %237 = arith.mulf %234, %236 : vector<8x256xf32>
    %c104 = arith.constant 104 : index
    %c0_63 = arith.constant 0 : index
    %238 = vector.load %arg14[%c104, %c0_63] : memref<360x256xf32, #tpu.memory_space<vmem>>, vector<8x256xf32>
    tpu.vector_store %arg14[%c104, %c0_63], %237 {strides = array<i32>} : memref<360x256xf32, #tpu.memory_space<vmem>>, vector<8x256xf32>,
    %239 = vector.extract_strided_slice %217 {offsets = [0, 255], sizes = [8, 1], strides = [1, 1]} : vector<8x256xf32> to vector<8x1xf32>
    %240 = vector.extract_strided_slice %217 {offsets = [0, 0], sizes = [8, 255], strides = [1, 1]} : vector<8x256xf32> to vector<8x255xf32>
    %241 = tpu.concatenate %239, %240 in 1 : vector<8x1xf32>, vector<8x255xf32> -> vector<8x256xf32>
    %242 = vector.extract_strided_slice %2 {offsets = [3, 0], sizes = [1, 256], strides = [1, 1]} : vector<9x256xf32> to vector<1x256xf32>
    %243 = vector.broadcast %242 : vector<1x256xf32> to vector<8x256xf32>
    %244 = arith.mulf %241, %243 : vector<8x256xf32>
    %c144 = arith.constant 144 : index
    %c0_64 = arith.constant 0 : index
    %245 = vector.load %arg14[%c144, %c0_64] : memref<360x256xf32, #tpu.memory_space<vmem>>, vector<8x256xf32>
    tpu.vector_store %arg14[%c144, %c0_64], %244 {strides = array<i32>} : memref<360x256xf32, #tpu.memory_space<vmem>>, vector<8x256xf32>,
    %246 = vector.extract_strided_slice %2 {offsets = [4, 0], sizes = [1, 256], strides = [1, 1]} : vector<9x256xf32> to vector<1x256xf32>
    %247 = vector.broadcast %246 : vector<1x256xf32> to vector<8x256xf32>
    %248 = arith.mulf %217, %247 : vector<8x256xf32>
    %c184 = arith.constant 184 : index
    %c0_65 = arith.constant 0 : index
    %249 = vector.load %arg14[%c184, %c0_65] : memref<360x256xf32, #tpu.memory_space<vmem>>, vector<8x256xf32>
    tpu.vector_store %arg14[%c184, %c0_65], %248 {strides = array<i32>} : memref<360x256xf32, #tpu.memory_space<vmem>>, vector<8x256xf32>,
    %250 = vector.extract_strided_slice %217 {offsets = [0, 1], sizes = [8, 255], strides = [1, 1]} : vector<8x256xf32> to vector<8x255xf32>
    %251 = vector.extract_strided_slice %217 {offsets = [0, 0], sizes = [8, 1], strides = [1, 1]} : vector<8x256xf32> to vector<8x1xf32>
    %252 = tpu.concatenate %250, %251 in 1 : vector<8x255xf32>, vector<8x1xf32> -> vector<8x256xf32>
    %253 = vector.extract_strided_slice %2 {offsets = [5, 0], sizes = [1, 256], strides = [1, 1]} : vector<9x256xf32> to vector<1x256xf32>
    %254 = vector.broadcast %253 : vector<1x256xf32> to vector<8x256xf32>
    %255 = arith.mulf %252, %254 : vector<8x256xf32>
    %c224 = arith.constant 224 : index
    %c0_66 = arith.constant 0 : index
    %256 = vector.load %arg14[%c224, %c0_66] : memref<360x256xf32, #tpu.memory_space<vmem>>, vector<8x256xf32>
    tpu.vector_store %arg14[%c224, %c0_66], %255 {strides = array<i32>} : memref<360x256xf32, #tpu.memory_space<vmem>>, vector<8x256xf32>,
    %257 = vector.extract_strided_slice %217 {offsets = [0, 15], sizes = [8, 241], strides = [1, 1]} : vector<8x256xf32> to vector<8x241xf32>
    %258 = vector.extract_strided_slice %217 {offsets = [0, 0], sizes = [8, 15], strides = [1, 1]} : vector<8x256xf32> to vector<8x15xf32>
    %259 = tpu.concatenate %257, %258 in 1 : vector<8x241xf32>, vector<8x15xf32> -> vector<8x256xf32>
    %260 = vector.extract_strided_slice %2 {offsets = [6, 0], sizes = [1, 256], strides = [1, 1]} : vector<9x256xf32> to vector<1x256xf32>
    %261 = vector.broadcast %260 : vector<1x256xf32> to vector<8x256xf32>
    %262 = arith.mulf %259, %261 : vector<8x256xf32>
    %c264 = arith.constant 264 : index
    %c0_67 = arith.constant 0 : index
    %263 = vector.load %arg14[%c264, %c0_67] : memref<360x256xf32, #tpu.memory_space<vmem>>, vector<8x256xf32>
    tpu.vector_store %arg14[%c264, %c0_67], %262 {strides = array<i32>} : memref<360x256xf32, #tpu.memory_space<vmem>>, vector<8x256xf32>,
    %264 = vector.extract_strided_slice %217 {offsets = [0, 16], sizes = [8, 240], strides = [1, 1]} : vector<8x256xf32> to vector<8x240xf32>
    %265 = vector.extract_strided_slice %217 {offsets = [0, 0], sizes = [8, 16], strides = [1, 1]} : vector<8x256xf32> to vector<8x16xf32>
    %266 = tpu.concatenate %264, %265 in 1 : vector<8x240xf32>, vector<8x16xf32> -> vector<8x256xf32>
    %267 = vector.extract_strided_slice %2 {offsets = [7, 0], sizes = [1, 256], strides = [1, 1]} : vector<9x256xf32> to vector<1x256xf32>
    %268 = vector.broadcast %267 : vector<1x256xf32> to vector<8x256xf32>
    %269 = arith.mulf %266, %268 : vector<8x256xf32>
    %c304 = arith.constant 304 : index
    %c0_68 = arith.constant 0 : index
    %270 = vector.load %arg14[%c304, %c0_68] : memref<360x256xf32, #tpu.memory_space<vmem>>, vector<8x256xf32>
    tpu.vector_store %arg14[%c304, %c0_68], %269 {strides = array<i32>} : memref<360x256xf32, #tpu.memory_space<vmem>>, vector<8x256xf32>,
    %271 = vector.extract_strided_slice %217 {offsets = [0, 17], sizes = [8, 239], strides = [1, 1]} : vector<8x256xf32> to vector<8x239xf32>
    %272 = vector.extract_strided_slice %217 {offsets = [0, 0], sizes = [8, 17], strides = [1, 1]} : vector<8x256xf32> to vector<8x17xf32>
    %273 = tpu.concatenate %271, %272 in 1 : vector<8x239xf32>, vector<8x17xf32> -> vector<8x256xf32>
    %274 = vector.extract_strided_slice %2 {offsets = [8, 0], sizes = [1, 256], strides = [1, 1]} : vector<9x256xf32> to vector<1x256xf32>
    %275 = vector.broadcast %274 : vector<1x256xf32> to vector<8x256xf32>
    %276 = arith.mulf %273, %275 : vector<8x256xf32>
    %c344 = arith.constant 344 : index
    %c0_69 = arith.constant 0 : index
    %277 = vector.load %arg14[%c344, %c0_69] : memref<360x256xf32, #tpu.memory_space<vmem>>, vector<8x256xf32>
    tpu.vector_store %arg14[%c344, %c0_69], %276 {strides = array<i32>} : memref<360x256xf32, #tpu.memory_space<vmem>>, vector<8x256xf32>,
    %c0_70 = arith.constant 0 : index
    %c0_71 = arith.constant 0 : index
    %278 = vector.load %arg6[%c0_70, %c0_71] : memref<8x360xf32, #tpu.memory_space<vmem>>, vector<8x360xf32>
    %c0_72 = arith.constant 0 : index
    %c0_73 = arith.constant 0 : index
    %279 = vector.load %arg14[%c0_72, %c0_73] : memref<360x256xf32, #tpu.memory_space<vmem>>, vector<360x256xf32>
    %cst_74 = arith.constant dense<0.000000e+00> : vector<8x256xf32>
    %280 = tpu.matmul %278, %279, %cst_74 {dimension_numbers = #tpu.dot_dimension_numbers<[1], [0], [0], [1], [0, 0, 1, 1], [], []>} : vector<8x360xf32>, vector<360x256xf32>, vector<8x256xf32> -> vector<8x256xf32>
    %c0_75 = arith.constant 0 : index
    %c0_76 = arith.constant 0 : index
    %281 = vector.load %arg11[%c0_75, %c0_76] : memref<8x1xf32, #tpu.memory_space<vmem>>, vector<8x1xf32>
    %282 = vector.broadcast %281 : vector<8x1xf32> to vector<8x256xf32>
    %283 = arith.addf %280, %282 : vector<8x256xf32>
    %cst_77 = arith.constant 0.000000e+00 : f32
    %284 = vector.broadcast %cst_77 : f32 to vector<8x256xf32>
    %285 = arith.cmpf oge, %283, %284 : vector<8x256xf32>
    %cst_78 = arith.constant 2.000000e-01 : f32
    %286 = vector.broadcast %cst_78 : f32 to vector<8x256xf32>
    %287 = arith.mulf %286, %283 : vector<8x256xf32>
    %288 = arith.select %285, %283, %287 : vector<8x256xi1>, vector<8x256xf32>
    %289 = vector.extract_strided_slice %288 {offsets = [0, 239], sizes = [8, 17], strides = [1, 1]} : vector<8x256xf32> to vector<8x17xf32>
    %290 = vector.extract_strided_slice %288 {offsets = [0, 0], sizes = [8, 239], strides = [1, 1]} : vector<8x256xf32> to vector<8x239xf32>
    %291 = tpu.concatenate %289, %290 in 1 : vector<8x17xf32>, vector<8x239xf32> -> vector<8x256xf32>
    %292 = vector.extract_strided_slice %2 {offsets = [0, 0], sizes = [1, 256], strides = [1, 1]} : vector<9x256xf32> to vector<1x256xf32>
    %293 = vector.broadcast %292 : vector<1x256xf32> to vector<8x256xf32>
    %294 = arith.mulf %291, %293 : vector<8x256xf32>
    %c32 = arith.constant 32 : index
    %c0_79 = arith.constant 0 : index
    %295 = vector.load %arg14[%c32, %c0_79] : memref<360x256xf32, #tpu.memory_space<vmem>>, vector<8x256xf32>
    tpu.vector_store %arg14[%c32, %c0_79], %294 {strides = array<i32>} : memref<360x256xf32, #tpu.memory_space<vmem>>, vector<8x256xf32>,
    %296 = vector.extract_strided_slice %288 {offsets = [0, 240], sizes = [8, 16], strides = [1, 1]} : vector<8x256xf32> to vector<8x16xf32>
    %297 = vector.extract_strided_slice %288 {offsets = [0, 0], sizes = [8, 240], strides = [1, 1]} : vector<8x256xf32> to vector<8x240xf32>
    %298 = tpu.concatenate %296, %297 in 1 : vector<8x16xf32>, vector<8x240xf32> -> vector<8x256xf32>
    %299 = vector.extract_strided_slice %2 {offsets = [1, 0], sizes = [1, 256], strides = [1, 1]} : vector<9x256xf32> to vector<1x256xf32>
    %300 = vector.broadcast %299 : vector<1x256xf32> to vector<8x256xf32>
    %301 = arith.mulf %298, %300 : vector<8x256xf32>
    %c72 = arith.constant 72 : index
    %c0_80 = arith.constant 0 : index
    %302 = vector.load %arg14[%c72, %c0_80] : memref<360x256xf32, #tpu.memory_space<vmem>>, vector<8x256xf32>
    tpu.vector_store %arg14[%c72, %c0_80], %301 {strides = array<i32>} : memref<360x256xf32, #tpu.memory_space<vmem>>, vector<8x256xf32>,
    %303 = vector.extract_strided_slice %288 {offsets = [0, 241], sizes = [8, 15], strides = [1, 1]} : vector<8x256xf32> to vector<8x15xf32>
    %304 = vector.extract_strided_slice %288 {offsets = [0, 0], sizes = [8, 241], strides = [1, 1]} : vector<8x256xf32> to vector<8x241xf32>
    %305 = tpu.concatenate %303, %304 in 1 : vector<8x15xf32>, vector<8x241xf32> -> vector<8x256xf32>
    %306 = vector.extract_strided_slice %2 {offsets = [2, 0], sizes = [1, 256], strides = [1, 1]} : vector<9x256xf32> to vector<1x256xf32>
    %307 = vector.broadcast %306 : vector<1x256xf32> to vector<8x256xf32>
    %308 = arith.mulf %305, %307 : vector<8x256xf32>
    %c112 = arith.constant 112 : index
    %c0_81 = arith.constant 0 : index
    %309 = vector.load %arg14[%c112, %c0_81] : memref<360x256xf32, #tpu.memory_space<vmem>>, vector<8x256xf32>
    tpu.vector_store %arg14[%c112, %c0_81], %308 {strides = array<i32>} : memref<360x256xf32, #tpu.memory_space<vmem>>, vector<8x256xf32>,
    %310 = vector.extract_strided_slice %288 {offsets = [0, 255], sizes = [8, 1], strides = [1, 1]} : vector<8x256xf32> to vector<8x1xf32>
    %311 = vector.extract_strided_slice %288 {offsets = [0, 0], sizes = [8, 255], strides = [1, 1]} : vector<8x256xf32> to vector<8x255xf32>
    %312 = tpu.concatenate %310, %311 in 1 : vector<8x1xf32>, vector<8x255xf32> -> vector<8x256xf32>
    %313 = vector.extract_strided_slice %2 {offsets = [3, 0], sizes = [1, 256], strides = [1, 1]} : vector<9x256xf32> to vector<1x256xf32>
    %314 = vector.broadcast %313 : vector<1x256xf32> to vector<8x256xf32>
    %315 = arith.mulf %312, %314 : vector<8x256xf32>
    %c152 = arith.constant 152 : index
    %c0_82 = arith.constant 0 : index
    %316 = vector.load %arg14[%c152, %c0_82] : memref<360x256xf32, #tpu.memory_space<vmem>>, vector<8x256xf32>
    tpu.vector_store %arg14[%c152, %c0_82], %315 {strides = array<i32>} : memref<360x256xf32, #tpu.memory_space<vmem>>, vector<8x256xf32>,
    %317 = vector.extract_strided_slice %2 {offsets = [4, 0], sizes = [1, 256], strides = [1, 1]} : vector<9x256xf32> to vector<1x256xf32>
    %318 = vector.broadcast %317 : vector<1x256xf32> to vector<8x256xf32>
    %319 = arith.mulf %288, %318 : vector<8x256xf32>
    %c192 = arith.constant 192 : index
    %c0_83 = arith.constant 0 : index
    %320 = vector.load %arg14[%c192, %c0_83] : memref<360x256xf32, #tpu.memory_space<vmem>>, vector<8x256xf32>
    tpu.vector_store %arg14[%c192, %c0_83], %319 {strides = array<i32>} : memref<360x256xf32, #tpu.memory_space<vmem>>, vector<8x256xf32>,
    %321 = vector.extract_strided_slice %288 {offsets = [0, 1], sizes = [8, 255], strides = [1, 1]} : vector<8x256xf32> to vector<8x255xf32>
    %322 = vector.extract_strided_slice %288 {offsets = [0, 0], sizes = [8, 1], strides = [1, 1]} : vector<8x256xf32> to vector<8x1xf32>
    %323 = tpu.concatenate %321, %322 in 1 : vector<8x255xf32>, vector<8x1xf32> -> vector<8x256xf32>
    %324 = vector.extract_strided_slice %2 {offsets = [5, 0], sizes = [1, 256], strides = [1, 1]} : vector<9x256xf32> to vector<1x256xf32>
    %325 = vector.broadcast %324 : vector<1x256xf32> to vector<8x256xf32>
    %326 = arith.mulf %323, %325 : vector<8x256xf32>
    %c232 = arith.constant 232 : index
    %c0_84 = arith.constant 0 : index
    %327 = vector.load %arg14[%c232, %c0_84] : memref<360x256xf32, #tpu.memory_space<vmem>>, vector<8x256xf32>
    tpu.vector_store %arg14[%c232, %c0_84], %326 {strides = array<i32>} : memref<360x256xf32, #tpu.memory_space<vmem>>, vector<8x256xf32>,
    %328 = vector.extract_strided_slice %288 {offsets = [0, 15], sizes = [8, 241], strides = [1, 1]} : vector<8x256xf32> to vector<8x241xf32>
    %329 = vector.extract_strided_slice %288 {offsets = [0, 0], sizes = [8, 15], strides = [1, 1]} : vector<8x256xf32> to vector<8x15xf32>
    %330 = tpu.concatenate %328, %329 in 1 : vector<8x241xf32>, vector<8x15xf32> -> vector<8x256xf32>
    %331 = vector.extract_strided_slice %2 {offsets = [6, 0], sizes = [1, 256], strides = [1, 1]} : vector<9x256xf32> to vector<1x256xf32>
    %332 = vector.broadcast %331 : vector<1x256xf32> to vector<8x256xf32>
    %333 = arith.mulf %330, %332 : vector<8x256xf32>
    %c272 = arith.constant 272 : index
    %c0_85 = arith.constant 0 : index
    %334 = vector.load %arg14[%c272, %c0_85] : memref<360x256xf32, #tpu.memory_space<vmem>>, vector<8x256xf32>
    tpu.vector_store %arg14[%c272, %c0_85], %333 {strides = array<i32>} : memref<360x256xf32, #tpu.memory_space<vmem>>, vector<8x256xf32>,
    %335 = vector.extract_strided_slice %288 {offsets = [0, 16], sizes = [8, 240], strides = [1, 1]} : vector<8x256xf32> to vector<8x240xf32>
    %336 = vector.extract_strided_slice %288 {offsets = [0, 0], sizes = [8, 16], strides = [1, 1]} : vector<8x256xf32> to vector<8x16xf32>
    %337 = tpu.concatenate %335, %336 in 1 : vector<8x240xf32>, vector<8x16xf32> -> vector<8x256xf32>
    %338 = vector.extract_strided_slice %2 {offsets = [7, 0], sizes = [1, 256], strides = [1, 1]} : vector<9x256xf32> to vector<1x256xf32>
    %339 = vector.broadcast %338 : vector<1x256xf32> to vector<8x256xf32>
    %340 = arith.mulf %337, %339 : vector<8x256xf32>
    %c312 = arith.constant 312 : index
    %c0_86 = arith.constant 0 : index
    %341 = vector.load %arg14[%c312, %c0_86] : memref<360x256xf32, #tpu.memory_space<vmem>>, vector<8x256xf32>
    tpu.vector_store %arg14[%c312, %c0_86], %340 {strides = array<i32>} : memref<360x256xf32, #tpu.memory_space<vmem>>, vector<8x256xf32>,
    %342 = vector.extract_strided_slice %288 {offsets = [0, 17], sizes = [8, 239], strides = [1, 1]} : vector<8x256xf32> to vector<8x239xf32>
    %343 = vector.extract_strided_slice %288 {offsets = [0, 0], sizes = [8, 17], strides = [1, 1]} : vector<8x256xf32> to vector<8x17xf32>
    %344 = tpu.concatenate %342, %343 in 1 : vector<8x239xf32>, vector<8x17xf32> -> vector<8x256xf32>
    %345 = vector.extract_strided_slice %2 {offsets = [8, 0], sizes = [1, 256], strides = [1, 1]} : vector<9x256xf32> to vector<1x256xf32>
    %346 = vector.broadcast %345 : vector<1x256xf32> to vector<8x256xf32>
    %347 = arith.mulf %344, %346 : vector<8x256xf32>
    %c352 = arith.constant 352 : index
    %c0_87 = arith.constant 0 : index
    %348 = vector.load %arg14[%c352, %c0_87] : memref<360x256xf32, #tpu.memory_space<vmem>>, vector<8x256xf32>
    tpu.vector_store %arg14[%c352, %c0_87], %347 {strides = array<i32>} : memref<360x256xf32, #tpu.memory_space<vmem>>, vector<8x256xf32>,
    %c0_88 = arith.constant 0 : index
    %c0_89 = arith.constant 0 : index
    %349 = vector.load %arg7[%c0_88, %c0_89] : memref<8x360xf32, #tpu.memory_space<vmem>>, vector<8x360xf32>
    %c0_90 = arith.constant 0 : index
    %c0_91 = arith.constant 0 : index
    %350 = vector.load %arg14[%c0_90, %c0_91] : memref<360x256xf32, #tpu.memory_space<vmem>>, vector<360x256xf32>
    %cst_92 = arith.constant dense<0.000000e+00> : vector<8x256xf32>
    %351 = tpu.matmul %349, %350, %cst_92 {dimension_numbers = #tpu.dot_dimension_numbers<[1], [0], [0], [1], [0, 0, 1, 1], [], []>} : vector<8x360xf32>, vector<360x256xf32>, vector<8x256xf32> -> vector<8x256xf32>
    %c0_93 = arith.constant 0 : index
    %c0_94 = arith.constant 0 : index
    %352 = vector.load %arg12[%c0_93, %c0_94] : memref<8x1xf32, #tpu.memory_space<vmem>>, vector<8x1xf32>
    %353 = vector.broadcast %352 : vector<8x1xf32> to vector<8x256xf32>
    %354 = arith.addf %351, %353 : vector<8x256xf32>
    %cst_95 = arith.constant 2.000000e-01 : f32
    %355 = vector.broadcast %cst_95 : f32 to vector<8x256xf32>
    %356 = arith.mulf %354, %355 : vector<8x256xf32>
    %357 = arith.addf %356, %4 : vector<8x256xf32>
    %c0_96 = arith.constant 0 : index
    %c0_97 = arith.constant 0 : index
    %c0_98 = arith.constant 0 : index
    %358 = vector.load %arg13[%c0_96, %c0_97, %c0_98] : memref<1x8x256xf32, #tpu.memory_space<vmem>>, vector<1x8x256xf32>
    %359 = vector.shape_cast %358 : vector<1x8x256xf32> to vector<8x256xf32>
    %360 = vector.shape_cast %357 : vector<8x256xf32> to vector<1x8x256xf32>
    tpu.vector_store %arg13[%c0_96, %c0_97, %c0_98], %360 {strides = array<i32>} : memref<1x8x256xf32, #tpu.memory_space<vmem>>, vector<1x8x256xf32>,
    return
  }
  func.func @transform_0(%arg0: i32) -> (i32, i32, i32) {
    %c0_i32 = arith.constant 0 : i32
    %c0_i32_0 = arith.constant 0 : i32
    %c0_i32_1 = arith.constant 0 : i32
    return %arg0, %c0_i32, %c0_i32_0 : i32, i32, i32
  }
  func.func @transform_1(%arg0: i32) -> (i32, i32) {
    %c0_i32 = arith.constant 0 : i32
    %c0_i32_0 = arith.constant 0 : i32
    %c0_i32_1 = arith.constant 0 : i32
    return %c0_i32, %c0_i32_0 : i32, i32
  }
  func.func @transform_2(%arg0: i32) -> (i32, i32) {
    %c0_i32 = arith.constant 0 : i32
    %c0_i32_0 = arith.constant 0 : i32
    %c0_i32_1 = arith.constant 0 : i32
    return %c0_i32, %c0_i32_0 : i32, i32
  }
  func.func @transform_3(%arg0: i32) -> (i32, i32) {
    %c0_i32 = arith.constant 0 : i32
    %c0_i32_0 = arith.constant 0 : i32
    %c0_i32_1 = arith.constant 0 : i32
    return %c0_i32, %c0_i32_0 : i32, i32
  }
  func.func @transform_4(%arg0: i32) -> (i32, i32) {
    %c0_i32 = arith.constant 0 : i32
    %c0_i32_0 = arith.constant 0 : i32
    %c0_i32_1 = arith.constant 0 : i32
    return %c0_i32, %c0_i32_0 : i32, i32
  }
  func.func @transform_5(%arg0: i32) -> (i32, i32) {
    %c0_i32 = arith.constant 0 : i32
    %c0_i32_0 = arith.constant 0 : i32
    %c0_i32_1 = arith.constant 0 : i32
    return %c0_i32, %c0_i32_0 : i32, i32
  }
  func.func @transform_6(%arg0: i32) -> (i32, i32) {
    %c0_i32 = arith.constant 0 : i32
    %c0_i32_0 = arith.constant 0 : i32
    %c0_i32_1 = arith.constant 0 : i32
    return %c0_i32, %c0_i32_0 : i32, i32
  }
  func.func @transform_7(%arg0: i32) -> (i32, i32) {
    %c0_i32 = arith.constant 0 : i32
    %c0_i32_0 = arith.constant 0 : i32
    %c0_i32_1 = arith.constant 0 : i32
    return %c0_i32, %c0_i32_0 : i32, i32
  }
  func.func @transform_8(%arg0: i32) -> (i32, i32) {
    %c0_i32 = arith.constant 0 : i32
    %c0_i32_0 = arith.constant 0 : i32
    %c0_i32_1 = arith.constant 0 : i32
    return %c0_i32, %c0_i32_0 : i32, i32
  }
  func.func @transform_9(%arg0: i32) -> (i32, i32) {
    %c0_i32 = arith.constant 0 : i32
    %c0_i32_0 = arith.constant 0 : i32
    %c0_i32_1 = arith.constant 0 : i32
    return %c0_i32, %c0_i32_0 : i32, i32
  }
  func.func @transform_10(%arg0: i32) -> (i32, i32) {
    %c0_i32 = arith.constant 0 : i32
    %c0_i32_0 = arith.constant 0 : i32
    %c0_i32_1 = arith.constant 0 : i32
    return %c0_i32, %c0_i32_0 : i32, i32
  }
  func.func @transform_11(%arg0: i32) -> (i32, i32) {
    %c0_i32 = arith.constant 0 : i32
    %c0_i32_0 = arith.constant 0 : i32
    %c0_i32_1 = arith.constant 0 : i32
    return %c0_i32, %c0_i32_0 : i32, i32
  }
  func.func @transform_12(%arg0: i32) -> (i32, i32, i32) {
    %c0_i32 = arith.constant 0 : i32
    %c0_i32_0 = arith.constant 0 : i32
    %c0_i32_1 = arith.constant 0 : i32
    return %arg0, %c0_i32, %c0_i32_0 : i32, i32, i32
  }
}

</mosaic_0001>

<bundles_post_ra>
// kernel: rrdb_forward.3
= control target key start
LH: loop header
LB: loop body
LE: loop exit
PB: predicated region body
PF: predicated region fallthrough
CT: control target
= control target key end

     0   :  { %s2967_s21 = smov 0   ;;  %s3959_s0 = inlined_call_operand.vmem [shape: f32[2,8,256], index: 0, kind: input, shape index: {}]   ;;  %s3960_s1 = inlined_call_operand.vmem [shape: f32[9,256], index: 1, kind: input, shape index: {}]   ;;  %s3961_s2 = inlined_call_operand.vmem [shape: f32[8,360], index: 2, kind: input, shape index: {}]   ;;  %s3962_s3 = inlined_call_operand.vmem [shape: f32[8,360], index: 3, kind: input, shape index: {}]   ;;  %s3963_s4 = inlined_call_operand.vmem [shape: f32[8,360], index: 4, kind: input, shape index: {}]   ;;  %s3964_s5 = inlined_call_operand.vmem [shape: f32[8,360], index: 5, kind: input, shape index: {}]   ;;  %s3965_s6 = inlined_call_operand.vmem [shape: f32[8,360], index: 6, kind: input, shape index: {}]   ;;  %s3966_s7 = inlined_call_operand.vmem [shape: f32[8,1], index: 7, kind: input, shape index: {}]   ;;  %s3967_s8 = inlined_call_operand.vmem [shape: f32[8,1], index: 8, kind: input, shape index: {}]   ;;  %s3968_s9 = inlined_call_operand.vmem [shape: f32[8,1], index: 9, kind: input, shape index: {}]   ;;  %s3969_s10 = inlined_call_operand.vmem [shape: f32[8,1], index: 10, kind: input, shape index: {}]   ;;  %s3970_s11 = inlined_call_operand.vmem [shape: f32[8,1], index: 11, kind: input, shape index: {}]   ;;  %s3971_s12 = inlined_call_operand.vmem [shape: f32[2,8,256], index: 12, kind: output, shape index: {}]  }
   0x1 LB: > { %s2446_s22 = sadd.s32 4294967295, %s2889_s21   ;;  %p2450_p0 = scmp.ge.s32.totalorder %s2889_s21, 1  ;;  %s2889_s21 = sphi %s2967_s21, %s22_s21  }
   0x2   : > { %p362_p1 = scmp.lt.s32.totalorder %s2889_s21, 3 }
   0x4   : > { %p363_p2 = pnand %p2450_p0, %p362_p1 }
   0x6   : > { %366 = sbr.rel (%p363_p2) target bundleno = 2091 (0x82b), region = 68 }
   0xd   : > { %p404_p3 = scmp.lt.s32.totalorder %s2446_s22, 1  ;;  %v3978_v0 = vmov 0.0   ;;  %v3972_v1 = vmov 0.0|0.0   ;;  %s2893_s27 = smov 17   ;;  %v701_v4 = vld [vmem:[%s3961_s2 + $0x8] sm:$0xff]  ;;  %v793_v5 = vld [vmem:[%s3966_s7] sm:$0xff]  ;;  %v522_v7 = vlaneseq }
   0xe   : > { %938 = vmatprep.mubr.f32.mxu1 %v3978_v0  ;;  %2508 = vmatprep.subr.bf16.mxu1 %v3972_v1  ;;  %s2894_s28 = smov 16   ;;  %s2895_s29 = smov 15   ;;  %v2901_v6 = vmov 0   ;;  %v3038_v10 = vld [vmem:[%s3960_s1] sm:$0xff]  ;;  %v3043_v11 = vld [vmem:[%s3960_s1 + $0x8] sm:$0xff]  ;;  %vm517_vm0 = vcmask 138240  }
   0xf   : > { %s4010_s22 = smov (!%p404_p3, %s2446_s22), 1  ;;  %2509 = vmatpush1.bf16.msra.mxu1 %v3972_v1  ;;  %s2896_s30 = smov 1   ;;  %867 = vmatprep.mubr.f32.mxu0 %v701_v4  ;;  %v3032_v8 = vshrl.u32 %v522_v7, 7  ;;  %vm539_vm1 = vcmask 130048   ;;  %vm561_vm2 = vcmask 121856   ;;  %vm660_vm3 = vcmask 916480  }
  0x10   : > { %s2464_s23 = sshll.u32 %s4010_s22, 4  ;;  %s2897_s13 = smov 127   ;;  %2877 = vset.pattern.permute.xlu0 %v2901_v6  ;;  %2878 = vset.pattern.permute.xlu1 %v2901_v6  ;;  %vm583_vm4 = vcmask 7168   ;;  %vm682_vm5 = vcmask 908288   ;;  %vm799_vm6 = vcmask 850944   ;;  %vm616_vm7 = vcmask 1039360  }
  0x11   : > { %s2984_s26 = scalar_lea.vmem %s3959_s0, %s2464_s23  ;;  %s2898_s14 = smov 112   ;;  %v524_v9 = vsub.s32 0, %v3032_v8  ;;  %v546_v15 = vsub.s32 1, %v3032_v8  ;;  %v568_v32 = vsub.s32 2, %v3032_v8  ;;  %v668_v37 = vsub.s32 7, %v3032_v8 }
  0x12   : > { %v2988_v2 = vld [vmem:[%s2984_s26 + $0x8] sm:$0xff]  ;;  %v2996_v3 = vld [vmem:[%s2984_s26] sm:$0xff]  ;;  %s2899_s15 = smov 113   ;;  %s2900_s16 = smov 111   ;;  %v590_v48 = vsub.s32 3, %v3032_v8  ;;  %vm638_vm8 = vcmask 924672  }
  0x13   : > { %511 = vrot.lane.b32.xlu0 %v2988_v2, %s2893_s27  ;;  %534 = vrot.lane.b32.xlu1 %v2988_v2, %s2894_s28  ;;  %v3046_v14 = vrot.slane %v3038_v10, %v524_v9  ;;  %v3050_v16 = vrot.slane %v3043_v11, %v524_v9  ;;  %v3058_v22 = vrot.slane %v3043_v11, %v546_v15 }
  0x14   : > { %v3069_v29 = vrot.slane %v3038_v10, %v546_v15  ;;  %v3088_v38 = vrot.slane %v3043_v11, %v568_v32  ;;  %v3100_v43 = vrot.slane %v3038_v10, %v668_v37  ;;  %v3103_v44 = vrot.slane %v3043_v11, %v668_v37 }
  0x15   : > { %v3107_v45 = vrot.slane %v3038_v10, %v568_v32  ;;  %v3131_v57 = vrot.slane %v3043_v11, %v590_v48  ;;  %v3151_v4 = vrot.slane %v3038_v10, %v590_v48  ;;  %v624_v32 = vsub.s32 5, %v3032_v8 }
  0x17   : > { %515 = vrot.lane.b32.xlu0 %v2996_v3, %s2893_s27  ;;  %537 = vrot.lane.b32.xlu1 %v2996_v3, %s2894_s28  ;;  %v3221_v37 = vrot.slane %v3043_v11, %v624_v32  ;;  %v3235_v48 = vrot.slane %v3038_v10, %v624_v32 }
  0x1b   : > { %559 = vrot.lane.b32.xlu1 %v2996_v3, %s2895_s29  ;;  %556 = vrot.lane.b32.xlu0 %v2988_v2, %s2895_s29 }
  0x1f   : > { %581 = vrot.lane.b32.xlu1 %v2996_v3, %s2896_s30  ;;  %578 = vrot.lane.b32.xlu0 %v2988_v2, %s2896_s30 }
  0x23   : > { %614 = vrot.lane.b32.xlu1 %v2988_v2, %s2897_s13  ;;  %612 = vrot.lane.b32.xlu0 %v2996_v3, %s2897_s13 }
  0x27   : > { %658 = vrot.lane.b32.xlu1 %v2988_v2, %s2898_s14  ;;  %656 = vrot.lane.b32.xlu0 %v2996_v3, %s2898_s14 }
  0x2b   : > { %636 = vrot.lane.b32.xlu1 %v2988_v2, %s2899_s15  ;;  %634 = vrot.lane.b32.xlu0 %v2996_v3, %s2899_s15 }
  0x2f   : > { %680 = vrot.lane.b32.xlu1 %v2988_v2, %s2900_s16  ;;  %678 = vrot.lane.b32.xlu0 %v2996_v3, %s2900_s16 }
  0x33   : > { %796 = vperm.xlu0 %2877, %v793_v5  }
  0x85   : > { %v512_v12 = vpop.permute.xlu0 %511  ;;  %v535_v13 = vpop.permute.xlu1 %534 }
  0x89   : > { %v516_v17 = vpop.permute.xlu0 %515  ;;  %v538_v18 = vpop.permute.xlu1 %537 }
  0x8a   : > { %v518_v19 = vsel %vm517_vm0, %v516_v17, %v512_v12  ;;  %v521_v20 = vsel %vm517_vm0, %v512_v12, %v516_v17  ;;  %v540_v24 = vsel %vm539_vm1, %v538_v18, %v535_v13  ;;  %v543_v30 = vsel %vm539_vm1, %v535_v13, %v538_v18  ;;  %v3162_v12 = vld [vmem:[%s3960_s1 + $0x18] ss:$0 sm:$0xff] }
  0x8b   : > { %v3055_v21 = vmul.f32 %v3046_v14, %v521_v20  ;;  %v3061_v23 = vmul.f32 %v3050_v16, %v518_v19  ;;  %v3073_v31 = vmul.f32 %v3058_v22, %v540_v24  ;;  %v3078_v35 = vmul.f32 %v3069_v29, %v543_v30  ;;  %v3179_v19 = vld [vmem:[%s3960_s1 + $0x10] ss:$0 sm:$0xff] }
  0x8c   : > { %v602_v18 = vsub.s32 4, %v3032_v8 }
  0x8d   : > { %v2466_v25 = vpack.c.bf16 %v3978_v0, %v3061_v23  ;;  %v2468_v26 = vpack.c.bf16 %v3978_v0, %v3055_v21  ;;  %v560_v27 = vpop.permute.xlu1 %559  ;;  %v557_v28 = vpop.permute.xlu0 %556  ;;  %3987 = vst [vmem:[#allocation3_spill] sm:$0xff] %v3073_v31  ;;  %3988 = vst [vmem:[#allocation4_spill] sm:$0xff] %v3078_v35  ;;  %v3082_v36 = vpack.c.bf16 %v3073_v31, %v3978_v0 }
  0x8e   : > { %v3096_v41 = vpack.c.bf16 %v3078_v35, %v3978_v0  ;;  %v562_v42 = vsel %vm561_vm2, %v560_v27, %v557_v28  ;;  %v565_v46 = vsel %vm561_vm2, %v557_v28, %v560_v27  ;;  %v3196_v27 = vrot.slane %v3043_v11, %v602_v18  ;;  %v702_v28 = vld [vmem:[%s3961_s2 + $0x10] sm:$0xff] }
  0x8f   : > { %2467 = vmatprep.subr.bf16.mxu0 %v2466_v25  ;;  %v3112_v47 = vmul.f32 %v3088_v38, %v562_v42  ;;  %v3125_v55 = vmul.f32 %v3107_v45, %v565_v46  ;;  %v3204_v30 = vrot.slane %v3038_v10, %v602_v18 }
  0x90   : > { %2469 = vmatpush1.bf16.msra.mxu0 %v2468_v26 }
  0x91   : > { %2470 = vmatprep.subr.bf16.mxu0 %v3972_v1  ;;  %v582_v33 = vpop.permute.xlu1 %581  ;;  %v579_v34 = vpop.permute.xlu0 %578  ;;  %v2480_v56 = vpack.c.bf16 %v3978_v0, %v3112_v47  ;;  %v2482_v63 = vpack.c.bf16 %v3978_v0, %v3125_v55 }
  0x92   : > { %v584_v62 = vsel %vm583_vm4, %v582_v33, %v579_v34  ;;  %v587_v5 = vsel %vm583_vm4, %v579_v34, %v582_v33  ;;  %v3211_v33 = vmul.f32 %v3196_v27, %v2988_v2  ;;  %v3217_v34 = vmul.f32 %v3204_v30, %v2996_v3 }
  0x93   : > { %v3156_v6 = vmul.f32 %v3131_v57, %v584_v62  ;;  %v3166_v15 = vmul.f32 %v3151_v4, %v587_v5  ;;  %v700_v5 = vld [vmem:[%s3961_s2] sm:$0xff] }
  0x94   : > { %2471 = vmatpush1.bf16.msra.mxu0 %v3972_v1  ;;  %v2494_v42 = vpack.c.bf16 %v3978_v0, %v3211_v33  ;;  %v2496_v46 = vpack.c.bf16 %v3978_v0, %v3217_v34 }
  0x95   : > { %2473 = vmatprep.subr.bf16.mxu0 %v3082_v36  ;;  %v3090_v39 = vpop.permute.xlu1 %614  ;;  %v3092_v40 = vpop.permute.xlu0 %612  ;;  %3991 = vst [vmem:[#allocation7_spill] sm:$0xff] %v3156_v6  ;;  %3992 = vst [vmem:[#allocation8_spill] sm:$0xff] %v3166_v15  ;;  %v3171_v17 = vpack.c.bf16 %v3156_v6, %v3978_v0  ;;  %v3187_v25 = vpack.c.bf16 %v3166_v15, %v3978_v0 }
  0x96   : > { %v621_v2 = vsel %vm616_vm7, %v3090_v39, %v3092_v40 }
  0x97   : > { %v3232_v3 = vmul.f32 %v3221_v37, %v621_v2 }
  0x98   : > { %2475 = vmatpush1.bf16.msra.mxu0 %v3096_v41 }
  0x99   : > { %2476 = vmatprep.subr.bf16.mxu0 %v3972_v1  ;;  %v659_v49 = vpop.permute.xlu1 %658  ;;  %v657_v50 = vpop.permute.xlu0 %656  ;;  %3993 = vst [vmem:[#allocation9_spill] sm:$0xff] %v3232_v3 }
  0x9a   : > { %v661_v51 = vsel %vm660_vm3, %v657_v50, %v659_v49  ;;  %v665_v52 = vsel %vm660_vm3, %v659_v49, %v657_v50  ;;  %v617_v49 = vsel %vm616_vm7, %v3092_v40, %v3090_v39  ;;  %v3242_v50 = vpack.c.bf16 %v3232_v3, %v3978_v0 }
  0x9b   : > { %v3118_v53 = vmul.f32 %v3100_v43, %v661_v51  ;;  %v3121_v54 = vmul.f32 %v3103_v44, %v665_v52  ;;  %v3246_v51 = vmul.f32 %v3235_v48, %v617_v49  ;;  %v646_v52 = vsub.s32 6, %v3032_v8  ;;  %v1154_v49 = vld [vmem:[%s3967_s8] sm:$0xff] }
  0x9c   : > { %2477 = vmatpush1.bf16.msra.mxu0 %v3972_v1 }
  0x9d   : > { %3989 = vst [vmem:[#allocation5_spill] sm:$0xff] %v3118_v53  ;;  %3990 = vst [vmem:[#allocation6_spill] sm:$0xff] %v3121_v54  ;;  %2478 = vmatprep.subr.bf16.mxu0 %v3972_v1  ;;  %v3135_v58 = vpack.c.bf16 %v3121_v54, %v3978_v0  ;;  %v3139_v59 = vpack.c.bf16 %v3118_v53, %v3978_v0  ;;  %v3141_v60 = vpop.permute.xlu1 %636  ;;  %v3143_v61 = vpop.permute.xlu0 %634  ;;  %v3258_v39 = vrot.slane %v3043_v11, %v646_v52 }
  0x9e   : > { %3994 = vst [vmem:[#allocation10_spill] sm:$0xff] %v3246_v51  ;;  %v643_v40 = vsel %vm638_vm8, %v3141_v60, %v3143_v61  ;;  %v3269_v62 = vrot.slane %v3038_v10, %v646_v52  ;;  %v1062_v52 = vld [vmem:[%s3962_s3 + $0x8] sm:$0xff] }
  0x9f   : > { %2511 = vmatprep.subr.bf16.mxu1 %v3135_v58  ;;  %v3265_v8 = vmul.f32 %v3258_v39, %v643_v40 }
  0xa0   : > { %2479 = vmatpush1.bf16.msra.mxu0 %v3972_v1  ;;  %2513 = vmatpush1.bf16.msra.mxu1 %v3139_v59 }
  0xa1   : > { %2481 = vmatprep.subr.bf16.mxu0 %v2480_v56  ;;  %2514 = vmatprep.subr.bf16.mxu1 %v3972_v1  ;;  %v681_v7 = vpop.permute.xlu1 %680  ;;  %v679_v9 = vpop.permute.xlu0 %678  ;;  %v3253_v56 = vpack.c.bf16 %v3246_v51, %v3978_v0 }
  0xa2   : > { %v687_v13 = vsel %vm682_vm5, %v681_v7, %v679_v9  ;;  %v683_v20 = vsel %vm682_vm5, %v679_v9, %v681_v7 }
  0xa3   : > { %v3183_v24 = vmul.f32 %v3162_v12, %v687_v13  ;;  %v3191_v26 = vmul.f32 %v3179_v19, %v683_v20 }
  0xa4   : > { %2483 = vmatpush1.bf16.msra.mxu0 %v2482_v63  ;;  %2515 = vmatpush1.bf16.msra.mxu1 %v3972_v1  ;;  %v639_v63 = vsel %vm638_vm8, %v3143_v61, %v3141_v60 }
  0xa5   : > { %2484 = vmatprep.subr.bf16.mxu0 %v3972_v1  ;;  %2516 = vmatprep.subr.bf16.mxu1 %v3972_v1  ;;  %v3277_v11 = vmul.f32 %v3269_v62, %v639_v63 }
  0xa8   : > { %2485 = vmatpush1.bf16.msra.mxu0 %v3972_v1  ;;  %2517 = vmatpush1.bf16.msra.mxu1 %v3972_v1 }
  0xa9   : > { %2487 = vmatprep.subr.bf16.mxu0 %v3171_v17  ;;  %890 = vmatprep.subr.mxu1 %v3183_v24 }
  0xac   : > { %2489 = vmatpush1.bf16.msra.mxu0 %v3187_v25  ;;  %891 = vmatpush1.msra.mxu1 %v3191_v26 }
  0xad   : > { %2490 = vmatprep.subr.bf16.mxu0 %v3972_v1  ;;  %2457 = vmatmul.mubr.msk.f32.vlgmr.msra.gmra.mrb[0].mxu1 %vm799_vm6, %v702_v28 }
  0xae   : > { %1227 = vmatprep.mubr.f32.mxu1 %v1062_v52 }
  0xb0   : > { %2491 = vmatpush1.bf16.msra.mxu0 %v3972_v1 }
  0xb1   : > { %2492 = vmatprep.subr.bf16.mxu0 %v3972_v1 }
  0xb2   : > { %v797_v9 = vpop.permute.xlu0 %796 }
  0xb4   : > { %2493 = vmatpush1.bf16.msra.mxu0 %v3972_v1 }
  0xb5   : > { %2495 = vmatprep.subr.bf16.mxu0 %v2494_v42 }
  0xb8   : > { %2497 = vmatpush1.bf16.msra.mxu0 %v2496_v46 }
  0xb9   : > { %2498 = vmatprep.subr.bf16.mxu0 %v3972_v1 }
  0xbc   : > { %2499 = vmatpush1.bf16.msra.mxu0 %v3972_v1 }
  0xbd   : > { %2501 = vmatprep.subr.bf16.mxu0 %v3242_v50 }
  0xc0   : > { %2503 = vmatpush1.bf16.msra.mxu0 %v3253_v56 }
  0xc1   : > { %2504 = vmatprep.subr.bf16.mxu0 %v3972_v1 }
  0xc4   : > { %2505 = vmatpush1.bf16.msra.mxu0 %v3972_v1 }
  0xc5   : > { %2506 = vmatprep.subr.bf16.mxu0 %v3972_v1 }
  0xc8   : > { %2507 = vmatpush1.bf16.msra.mxu0 %v3972_v1 }
  0xc9   : > { %863 = vmatprep.subr.mxu0 %v3265_v8 }
  0xcc   : > { %864 = vmatpush1.msra.mxu0 %v3277_v11 }
  0xcd   : > { %868 = vmatmul.mubr.f32.vlgmr.msra.gmra.mrb[0].mxu0 %v700_v5 }
 0x180   : > { %v940_v10 = vpop.f32.mrb[0].mxu1 }
 0x181   : > { %v942_v7 = vpop.f32.mrb[1].mxu1 }
 0x1a0   : > { %v869_v13 = vpop.f32.mrb[0].mxu0 }
 0x1a1   : > { %v870_v18 = vadd.f32 %v869_v13, %v797_v9  ;;  %v871_v60 = vpop.f32.mrb[1].mxu0 }
 0x1a2   : > { %v872_v61 = vadd.f32 %v871_v60, %v797_v9 }
 0x1a3   : > { %v941_v20 = vadd.f32 %v940_v10, %v870_v18 }
 0x1a4   : > { %v943_v28 = vadd.f32 %v942_v7, %v872_v61 }
 0x1a5   : > { %v947_v42 = vmul.f32 0.2, %v941_v20  ;;  %vm945_vm10 = vcmp.ge.f32.partialorder %v941_v20, 0.0 }
 0x1a6   : > { %vm946_vm9 = vcmp.ge.f32.partialorder %v943_v28, 0.0  ;;  %v948_v32 = vmul.f32 0.2, %v943_v28 }
 0x1a7   : > { %v3289_v46 = vsel %vm945_vm10, %v941_v20, %v947_v42 }
 0x1a8   : > { %v3283_v2 = vsel %vm946_vm9, %v943_v28, %v948_v32 }
 0x1a9   : > { %966 = vrot.lane.b32.xlu0 %v3283_v2, %s2894_s28  ;;  %952 = vrot.lane.b32.xlu1 %v3283_v2, %s2893_s27 }
 0x1ad   : > { %979 = vrot.lane.b32.xlu0 %v3283_v2, %s2895_s29  ;;  %956 = vrot.lane.b32.xlu1 %v3289_v46, %s2893_s27 }
 0x1b1   : > { %992 = vrot.lane.b32.xlu0 %v3283_v2, %s2896_s30  ;;  %969 = vrot.lane.b32.xlu1 %v3289_v46, %s2894_s28 }
 0x1b5   : > { %1009 = vrot.lane.b32.xlu0 %v3289_v46, %s2897_s13  ;;  %982 = vrot.lane.b32.xlu1 %v3289_v46, %s2895_s29 }
 0x1b9   : > { %1022 = vrot.lane.b32.xlu0 %v3289_v46, %s2899_s15  ;;  %995 = vrot.lane.b32.xlu1 %v3289_v46, %s2896_s30 }
 0x1bd   : > { %1035 = vrot.lane.b32.xlu0 %v3289_v46, %s2898_s14  ;;  %1011 = vrot.lane.b32.xlu1 %v3283_v2, %s2897_s13 }
 0x1c1   : > { %1048 = vrot.lane.b32.xlu0 %v3289_v46, %s2900_s16  ;;  %1024 = vrot.lane.b32.xlu1 %v3283_v2, %s2899_s15 }
 0x1c5   : > { %1157 = vperm.xlu0 %2877, %v1154_v49   ;;  %1037 = vrot.lane.b32.xlu1 %v3283_v2, %s2898_s14 }
 0x1c9   : > { %1050 = vrot.lane.b32.xlu1 %v3283_v2, %s2900_s16 }
 0x21b   : > { %v953_v40 = vpop.permute.xlu1 %952  ;;  %v967_v61 = vpop.permute.xlu0 %966 }
 0x21f   : > { %v957_v63 = vpop.permute.xlu1 %956  ;;  %v980_v42 = vpop.permute.xlu0 %979 }
 0x220   : > { %v958_v5 = vsel %vm517_vm0, %v957_v63, %v953_v40  ;;  %v961_v10 = vsel %vm517_vm0, %v953_v40, %v957_v63 }
 0x221   : > { %v962_v7 = vmul.f32 %v961_v10, %v3046_v14  ;;  %v963_v9 = vmul.f32 %v958_v5, %v3050_v16 }
 0x223   : > { %v3330_v13 = vpack.c.bf16 %v963_v9, %v3061_v23  ;;  %v3333_v18 = vpack.c.bf16 %v962_v7, %v3055_v21  ;;  %v970_v60 = vpop.permute.xlu1 %969 }
 0x224   : > { %v971_v20 = vsel %vm539_vm1, %v970_v60, %v967_v61  ;;  %v974_v23 = vsel %vm539_vm1, %v967_v61, %v970_v60  ;;  %v993_v61 = vpop.permute.xlu0 %992 }
 0x225   : > { %2519 = vmatprep.subr.bf16.mxu1 %v3330_v13  ;;  %2587 = vmatprep.subr.bf16.mxu0 %v3330_v13  ;;  %v3343_v28 = vmul.f32 %v971_v20, %v3058_v22  ;;  %v3348_v32 = vmul.f32 %v974_v23, %v3069_v29 }
 0x226   : > { %2521 = vmatpush1.bf16.msra.mxu1 %v3333_v18  ;;  %2589 = vmatpush1.bf16.msra.mxu0 %v3333_v18 }
 0x227   : > { %2522 = vmatprep.subr.bf16.mxu1 %v3972_v1  ;;  %v983_v21 = vpop.permute.xlu1 %982  ;;  %v2528_v49 = vpack.c.bf16 %v3978_v0, %v3343_v28  ;;  %v2530_v40 = vpack.c.bf16 %v3978_v0, %v3348_v32 }
 0x228   : > { %v984_v52 = vsel %vm561_vm2, %v983_v21, %v980_v42  ;;  %v987_v63 = vsel %vm561_vm2, %v980_v42, %v983_v21 }
 0x229   : > { %v989_v5 = vmul.f32 %v984_v52, %v3088_v38  ;;  %v988_v10 = vmul.f32 %v987_v63, %v3107_v45  ;;  %v1005_v52 = vmul.f32 %v3289_v46, %v3204_v30 }
 0x22a   : > { %2523 = vmatpush1.bf16.msra.mxu1 %v3972_v1 }
 0x22b   : > { %2525 = vmatprep.subr.bf16.mxu1 %v3082_v36  ;;  %v3361_v7 = vpack.c.bf16 %v989_v5, %v3112_v47  ;;  %v996_v9 = vpop.permute.xlu1 %995  ;;  %v3366_v60 = vpack.c.bf16 %v988_v10, %v3125_v55  ;;  %v3396_v5 = vpack.c.bf16 %v1005_v52, %v3217_v34  ;;  %v1010_v10 = vpop.permute.xlu0 %1009 }
 0x22c   : > { %v997_v20 = vsel %vm583_vm4, %v996_v9, %v993_v61  ;;  %v1000_v23 = vsel %vm583_vm4, %v993_v61, %v996_v9 }
 0x22d   : > { %v3373_v47 = vmul.f32 %v997_v20, %v3131_v57  ;;  %v3378_v21 = vmul.f32 %v1000_v23, %v3151_v4 }
 0x22e   : > { %2527 = vmatpush1.bf16.msra.mxu1 %v3096_v41 }
 0x22f   : > { %2529 = vmatprep.subr.bf16.mxu1 %v2528_v49  ;;  %v2544_v55 = vpack.c.bf16 %v3978_v0, %v3373_v47  ;;  %v2546_v42 = vpack.c.bf16 %v3978_v0, %v3378_v21  ;;  %v1006_v49 = vmul.f32 %v3283_v2, %v3196_v27  ;;  %v1012_v63 = vpop.permute.xlu1 %1011  ;;  %v1023_v61 = vpop.permute.xlu0 %1022 }
 0x230   : > { %v1017_v2 = vsel %vm616_vm7, %v1012_v63, %v1010_v10  ;;  %v1013_v46 = vsel %vm616_vm7, %v1010_v10, %v1012_v63 }
 0x231   : > { %v3408_v34 = vmul.f32 %v1013_v46, %v3235_v48 }
 0x232   : > { %2531 = vmatpush1.bf16.msra.mxu1 %v2530_v40  ;;  %v3391_v40 = vpack.c.bf16 %v1006_v49, %v3211_v33  ;;  %v3403_v33 = vmul.f32 %v1017_v2, %v3221_v37 }
 0x233   : > { %2532 = vmatprep.subr.bf16.mxu1 %v3972_v1  ;;  %v1025_v9 = vpop.permute.xlu1 %1024  ;;  %v1036_v46 = vpop.permute.xlu0 %1035 }
 0x234   : > { %v2560_v20 = vpack.c.bf16 %v3978_v0, %v3403_v33  ;;  %v1030_v23 = vsel %vm638_vm8, %v1025_v9, %v1023_v61 }
 0x235   : > { %v1032_v49 = vmul.f32 %v1030_v23, %v3258_v39 }
 0x236   : > { %2533 = vmatpush1.bf16.msra.mxu1 %v3972_v1 }
 0x237   : > { %2535 = vmatprep.subr.bf16.mxu1 %v3361_v7  ;;  %v3421_v63 = vpack.c.bf16 %v1032_v49, %v3265_v8  ;;  %v1038_v10 = vpop.permute.xlu1 %1037 }
 0x238   : > { %v1039_v8 = vsel %vm660_vm3, %v1036_v46, %v1038_v10 }
 0x239   : > { %v3442_v23 = vmul.f32 %v1039_v8, %v3100_v43 }
 0x23a   : > { %2537 = vmatpush1.bf16.msra.mxu1 %v3366_v60 }
 0x23b   : > { %2538 = vmatprep.subr.bf16.mxu1 %v3972_v1 }
 0x23e   : > { %2539 = vmatpush1.bf16.msra.mxu1 %v3972_v1 }
 0x23f   : > { %2541 = vmatprep.subr.bf16.mxu1 %v3171_v17 }
 0x242   : > { %2543 = vmatpush1.bf16.msra.mxu1 %v3187_v25 }
 0x243   : > { %2545 = vmatprep.subr.bf16.mxu1 %v2544_v55  ;;  %v2562_v55 = vpack.c.bf16 %v3978_v0, %v3408_v34 }
 0x246   : > { %2547 = vmatpush1.bf16.msra.mxu1 %v2546_v42  ;;  %v1026_v42 = vsel %vm638_vm8, %v1023_v61, %v1025_v9  ;;  %v1043_v9 = vsel %vm660_vm3, %v1038_v10, %v1036_v46  ;;  %v1061_v61 = vld [vmem:[%s3962_s3] sm:$0xff] }
 0x247   : > { %2548 = vmatprep.subr.bf16.mxu1 %v3972_v1  ;;  %v1031_v52 = vmul.f32 %v1026_v42, %v3269_v62 }
 0x249   : > { %v3426_v2 = vpack.c.bf16 %v1031_v52, %v3277_v11  ;;  %v1051_v11 = vpop.permute.xlu1 %1050  ;;  %v2578_v52 = vpack.c.bf16 %v3978_v0, %v3442_v23 }
 0x24a   : > { %2549 = vmatpush1.bf16.msra.mxu1 %v3972_v1 }
 0x24b   : > { %2551 = vmatprep.subr.bf16.mxu1 %v3391_v40 }
 0x24e   : > { %2553 = vmatpush1.bf16.msra.mxu1 %v3396_v5 }
 0x24f   : > { %2554 = vmatprep.subr.bf16.mxu1 %v3972_v1 }
 0x252   : > { %2555 = vmatpush1.bf16.msra.mxu1 %v3972_v1 }
 0x253   : > { %2557 = vmatprep.subr.bf16.mxu1 %v3242_v50 }
 0x256   : > { %2559 = vmatpush1.bf16.msra.mxu1 %v3253_v56 }
 0x257   : > { %2561 = vmatprep.subr.bf16.mxu1 %v2560_v20  ;;  %v3436_v20 = vmul.f32 %v1043_v9, %v3103_v44 }
 0x259   : > { %v2576_v42 = vpack.c.bf16 %v3978_v0, %v3436_v20 }
 0x25a   : > { %2563 = vmatpush1.bf16.msra.mxu1 %v2562_v55  ;;  %v1049_v55 = vpop.permute.xlu0 %1048 }
 0x25b   : > { %2564 = vmatprep.subr.bf16.mxu1 %v3972_v1  ;;  %v1056_v49 = vsel %vm682_vm5, %v1051_v11, %v1049_v55  ;;  %v1052_v10 = vsel %vm682_vm5, %v1049_v55, %v1051_v11  ;;  %v1063_v11 = vld [vmem:[%s3962_s3 + $0x10] sm:$0xff] }
 0x25c   : > { %v1058_v46 = vmul.f32 %v3162_v12, %v1056_v49  ;;  %v1057_v9 = vmul.f32 %v3179_v19, %v1052_v10 }
 0x25e   : > { %2565 = vmatpush1.bf16.msra.mxu1 %v3972_v1  ;;  %v3460_v8 = vpack.c.bf16 %v1057_v9, %v3191_v26 }
 0x25f   : > { %2567 = vmatprep.subr.bf16.mxu1 %v3421_v63 }
 0x260   : > { %3995 = vst [vmem:[#allocation11_spill] sm:$0xff] %v3460_v8 }
 0x262   : > { %2569 = vmatpush1.bf16.msra.mxu1 %v3426_v2 }
 0x263   : > { %2570 = vmatprep.subr.bf16.mxu1 %v3972_v1 }
 0x265   : > { %1228 = vmatmul.mubr.f32.vlgmr.msra.gmra.mrb[2].mxu1 %v1061_v61  ;;  %v3455_v61 = vpack.c.bf16 %v1058_v46, %v3183_v24  ;;  %v1158_v24 = vpop.permute.xlu0 %1157 }
 0x266   : > { %2571 = vmatpush1.bf16.msra.mxu1 %v3972_v1  ;;  %1298 = vmatprep.mubr.f32.mxu1 %v3978_v0 }
 0x267   : > { %2573 = vmatprep.subr.bf16.mxu1 %v3135_v58 }
 0x26a   : > { %2575 = vmatpush1.bf16.msra.mxu1 %v3139_v59 }
 0x26b   : > { %2577 = vmatprep.subr.bf16.mxu1 %v2576_v42 }
 0x26e   : > { %2579 = vmatpush1.bf16.msra.mxu1 %v2578_v52 }
 0x26f   : > { %2580 = vmatprep.subr.bf16.mxu1 %v3972_v1 }
 0x272   : > { %2581 = vmatpush1.bf16.msra.mxu1 %v3972_v1 }
 0x273   : > { %2583 = vmatprep.subr.bf16.mxu1 %v3455_v61 }
 0x276   : > { %2585 = vmatpush1.bf16.msra.mxu1 %v3460_v8 }
 0x277   : > { %2663 = vmatprep.subr.bf16.mxu1 %v3330_v13 }
 0x279   : > { %2458 = vmatmul.mubr.msk.f32.vlgmr.msra.gmra.mrb[2].mxu1 %vm799_vm6, %v1063_v11  ;;  %v1422_v11 = vld [vmem:[%s3963_s4 + $0x8] sm:$0xff] }
 0x27a   : > { %2665 = vmatpush1.bf16.msra.mxu1 %v3333_v18  ;;  %1587 = vmatprep.mubr.f32.mxu0 %v1422_v11 }
 0x34c   : > { %v1300_v55 = vpop.f32.mrb[2].mxu1 }
 0x34d   : > { %v2842_v42 = vadd.f32 %v1300_v55, %v1158_v24  ;;  %v1302_v49 = vpop.f32.mrb[3].mxu1 }
 0x34e   : > { %v2843_v52 = vadd.f32 %v1302_v49, %v1158_v24  ;;  %v1514_v24 = vld [vmem:[%s3968_s9] sm:$0xff] }
 0x34f   : > { %vm1305_vm11 = vcmp.ge.f32.partialorder %v2842_v42, 0.0  ;;  %v1307_v26 = vmul.f32 0.2, %v2842_v42 }
 0x350   : > { %vm1306_vm12 = vcmp.ge.f32.partialorder %v2843_v52, 0.0  ;;  %v1308_v10 = vmul.f32 0.2, %v2843_v52 }
 0x351   : > { %v3469_v46 = vsel %vm1305_vm11, %v2842_v42, %v1307_v26 }
 0x352   : > { %v3471_v9 = vsel %vm1306_vm12, %v2843_v52, %v1308_v10  ;;  %1316 = vrot.lane.b32.xlu0 %v3469_v46, %s2893_s27 }
 0x353   : > { %1312 = vrot.lane.b32.xlu1 %v3471_v9, %s2893_s27 }
 0x356   : > { %1329 = vrot.lane.b32.xlu0 %v3469_v46, %s2894_s28 }
 0x357   : > { %1326 = vrot.lane.b32.xlu1 %v3471_v9, %s2894_s28 }
 0x35a   : > { %1342 = vrot.lane.b32.xlu0 %v3469_v46, %s2895_s29 }
 0x35b   : > { %1339 = vrot.lane.b32.xlu1 %v3471_v9, %s2895_s29 }
 0x35e   : > { %1355 = vrot.lane.b32.xlu0 %v3469_v46, %s2896_s30 }
 0x35f   : > { %1352 = vrot.lane.b32.xlu1 %v3471_v9, %s2896_s30 }
 0x362   : > { %1371 = vrot.lane.b32.xlu0 %v3471_v9, %s2897_s13 }
 0x363   : > { %1369 = vrot.lane.b32.xlu1 %v3469_v46, %s2897_s13 }
 0x366   : > { %1384 = vrot.lane.b32.xlu0 %v3471_v9, %s2899_s15 }
 0x367   : > { %1382 = vrot.lane.b32.xlu1 %v3469_v46, %s2899_s15 }
 0x36a   : > { %1397 = vrot.lane.b32.xlu0 %v3471_v9, %s2898_s14 }
 0x36b   : > { %1395 = vrot.lane.b32.xlu1 %v3469_v46, %s2898_s14 }
 0x36e   : > { %1410 = vrot.lane.b32.xlu0 %v3471_v9, %s2900_s16 }
 0x36f   : > { %1408 = vrot.lane.b32.xlu1 %v3469_v46, %s2900_s16 }
 0x373   : > { %1517 = vperm.xlu1 %2878, %v1514_v24  }
 0x3c4   : > { %v1317_v55 = vpop.permute.xlu0 %1316 }
 0x3c5   : > { %v1313_v42 = vpop.permute.xlu1 %1312 }
 0x3c6   : > { %v1318_v49 = vsel %vm517_vm0, %v1317_v55, %v1313_v42  ;;  %v1321_v52 = vsel %vm517_vm0, %v1313_v42, %v1317_v55 }
 0x3c7   : > { %v3514_v26 = vmul.f32 %v1321_v52, %v3046_v14  ;;  %v3517_v10 = vmul.f32 %v1318_v49, %v3050_v16 }
 0x3c8   : > { %v1330_v1 = vpop.permute.xlu0 %1329 }
 0x3c9   : > { %v2592_v11 = vpack.c.bf16 %v3978_v0, %v3514_v26  ;;  %v1327_v51 = vpop.permute.xlu1 %1326  ;;  %v2590_v24 = vpack.c.bf16 %v3978_v0, %v3517_v10 }
 0x3ca   : > { %v1331_v3 = vsel %vm539_vm1, %v1330_v1, %v1327_v51  ;;  %v1334_v15 = vsel %vm539_vm1, %v1327_v51, %v1330_v1 }
 0x3cb   : > { %v1336_v55 = vmul.f32 %v1331_v3, %v3058_v22  ;;  %2591 = vmatprep.subr.bf16.mxu0 %v2590_v24  ;;  %v1335_v42 = vmul.f32 %v1334_v15, %v3069_v29  ;;  %v3996_v3 = vmov 0.0|0.0   ;;  %v3997_v24 = vmov 0.0  }
 0x3cc   : > { %2593 = vmatpush1.bf16.msra.mxu0 %v2592_v11  ;;  %v1343_v52 = vpop.permute.xlu0 %1342 }
 0x3cd   : > { %2595 = vmatprep.subr.bf16.mxu0 %v3082_v36  ;;  %v3529_v49 = vpack.c.bf16 %v1336_v55, %v3343_v28  ;;  %v1340_v6 = vpop.permute.xlu1 %1339  ;;  %v3534_v0 = vpack.c.bf16 %v1335_v42, %v3348_v32 }
 0x3ce   : > { %v1344_v1 = vsel %vm561_vm2, %v1343_v52, %v1340_v6  ;;  %v1347_v15 = vsel %vm561_vm2, %v1340_v6, %v1343_v52 }
 0x3cf   : > { %v3541_v51 = vmul.f32 %v1344_v1, %v3088_v38  ;;  %v3546_v32 = vmul.f32 %v1347_v15, %v3107_v45 }
 0x3d0   : > { %2597 = vmatpush1.bf16.msra.mxu0 %v3096_v41  ;;  %v1356_v28 = vpop.permute.xlu0 %1355 }
 0x3d1   : > { %2599 = vmatprep.subr.bf16.mxu0 %v3529_v49  ;;  %v1353_v11 = vpop.permute.xlu1 %1352  ;;  %v2608_v55 = vpack.c.bf16 %v3997_v24, %v3541_v51  ;;  %v2610_v6 = vpack.c.bf16 %v3997_v24, %v3546_v32 }
 0x3d2   : > { %v1357_v42 = vsel %vm583_vm4, %v1356_v28, %v1353_v11  ;;  %v1360_v52 = vsel %vm583_vm4, %v1353_v11, %v1356_v28  ;;  %v3570_v28 = vmul.f32 %v3471_v9, %v3196_v27 }
 0x3d3   : > { %v1362_v1 = vmul.f32 %v1357_v42, %v3131_v57  ;;  %v1361_v15 = vmul.f32 %v1360_v52, %v3151_v4  ;;  %v3576_v42 = vmul.f32 %v3469_v46, %v3204_v30 }
 0x3d4   : > { %2601 = vmatpush1.bf16.msra.mxu0 %v3534_v0  ;;  %v1372_v11 = vpop.permute.xlu0 %1371 }
 0x3d5   : > { %2602 = vmatprep.subr.bf16.mxu0 %v3996_v3  ;;  %v3559_v54 = vpack.c.bf16 %v1362_v1, %v3373_v47  ;;  %v1370_v47 = vpop.permute.xlu1 %1369  ;;  %v2628_v9 = vpack.c.bf16 %v3997_v24, %v3576_v42 }
 0x3d6   : > { %v1373_v52 = vsel %vm616_vm7, %v1370_v47, %v1372_v11 }
 0x3d7   : > { %v1378_v46 = vmul.f32 %v1373_v52, %v3235_v48 }
 0x3d8   : > { %2603 = vmatpush1.bf16.msra.mxu0 %v3996_v3  ;;  %v1385_v53 = vpop.permute.xlu0 %1384 }
 0x3d9   : > { %2605 = vmatprep.subr.bf16.mxu0 %v3361_v7  ;;  %v1383_v31 = vpop.permute.xlu1 %1382 }
 0x3dc   : > { %2607 = vmatpush1.bf16.msra.mxu0 %v3366_v60 }
 0x3dd   : > { %2609 = vmatprep.subr.bf16.mxu0 %v2608_v55  ;;  %v3564_v55 = vpack.c.bf16 %v1361_v15, %v3378_v21  ;;  %v2626_v21 = vpack.c.bf16 %v3997_v24, %v3570_v28 }
 0x3e0   : > { %2611 = vmatpush1.bf16.msra.mxu0 %v2610_v6  ;;  %v1377_v6 = vsel %vm616_vm7, %v1372_v11, %v1370_v47  ;;  %v1390_v11 = vsel %vm638_vm8, %v1385_v53, %v1383_v31  ;;  %v1386_v47 = vsel %vm638_vm8, %v1383_v31, %v1385_v53  ;;  %v1421_v31 = vld [vmem:[%s3963_s4] sm:$0xff] }
 0x3e1   : > { %2613 = vmatprep.subr.bf16.mxu0 %v3171_v17  ;;  %v1379_v1 = vmul.f32 %v1377_v6, %v3221_v37  ;;  %v1398_v6 = vpop.permute.xlu0 %1397 }
 0x3e3   : > { %v3589_v15 = vpack.c.bf16 %v1379_v1, %v3403_v33  ;;  %v3601_v33 = vmul.f32 %v1390_v11, %v3258_v39 }
 0x3e4   : > { %2615 = vmatpush1.bf16.msra.mxu0 %v3187_v25 }
 0x3e5   : > { %2617 = vmatprep.subr.bf16.mxu0 %v3559_v54  ;;  %v2644_v52 = vpack.c.bf16 %v3997_v24, %v3601_v33 }
 0x3e8   : > { %2619 = vmatpush1.bf16.msra.mxu0 %v3564_v55 }
 0x3e9   : > { %2620 = vmatprep.subr.bf16.mxu0 %v3996_v3 }
 0x3ec   : > { %2621 = vmatpush1.bf16.msra.mxu0 %v3996_v3 }
 0x3ed   : > { %2623 = vmatprep.subr.bf16.mxu0 %v3391_v40 }
 0x3f0   : > { %2625 = vmatpush1.bf16.msra.mxu0 %v3396_v5 }
 0x3f1   : > { %2627 = vmatprep.subr.bf16.mxu0 %v2626_v21  ;;  %v3594_v21 = vpack.c.bf16 %v1378_v46, %v3408_v34  ;;  %v3606_v34 = vmul.f32 %v1386_v47, %v3269_v62 }
 0x3f3   : > { %v2646_v53 = vpack.c.bf16 %v3997_v24, %v3606_v34 }
 0x3f4   : > { %2629 = vmatpush1.bf16.msra.mxu0 %v2628_v9  ;;  %v1396_v9 = vpop.permute.xlu1 %1395 }
 0x3f5   : > { %2631 = vmatprep.subr.bf16.mxu0 %v3242_v50  ;;  %v1403_v1 = vsel %vm660_vm3, %v1398_v6, %v1396_v9  ;;  %v1399_v46 = vsel %vm660_vm3, %v1396_v9, %v1398_v6  ;;  %v1411_v6 = vpop.permute.xlu0 %1410 }
 0x3f6   : > { %v1405_v11 = vmul.f32 %v1403_v1, %v3103_v44  ;;  %v1404_v47 = vmul.f32 %v1399_v46, %v3100_v43 }
 0x3f8   : > { %2633 = vmatpush1.bf16.msra.mxu0 %v3253_v56  ;;  %v3623_v35 = vpack.c.bf16 %v1405_v11, %v3436_v20  ;;  %v1409_v9 = vpop.permute.xlu1 %1408 }
 0x3f9   : > { %2635 = vmatprep.subr.bf16.mxu0 %v3589_v15  ;;  %v1416_v1 = vsel %vm682_vm5, %v1411_v6, %v1409_v9  ;;  %v1412_v20 = vsel %vm682_vm5, %v1409_v9, %v1411_v6 }
 0x3fc   : > { %2637 = vmatpush1.bf16.msra.mxu0 %v3594_v21 }
 0x3fd   : > { %2638 = vmatprep.subr.bf16.mxu0 %v3996_v3 }
 0x400   : > { %2639 = vmatpush1.bf16.msra.mxu0 %v3996_v3 }
 0x401   : > { %2641 = vmatprep.subr.bf16.mxu0 %v3421_v63 }
 0x404   : > { %2643 = vmatpush1.bf16.msra.mxu0 %v3426_v2 }
 0x405   : > { %2645 = vmatprep.subr.bf16.mxu0 %v2644_v52  ;;  %v3628_v52 = vpack.c.bf16 %v1404_v47, %v3442_v23  ;;  %v3642_v23 = vmul.f32 %v3179_v19, %v1412_v20 }
 0x407   : > { %1588 = vmatmul.mubr.f32.vlgmr.msra.gmra.mrb[2].mxu0 %v1421_v31  ;;  %v3637_v31 = vmul.f32 %v3162_v12, %v1416_v1  ;;  %3998 = vst [vmem:[#allocation12_spill] sm:$0xff] %v3642_v23 }
 0x408   : > { %2647 = vmatpush1.bf16.msra.mxu0 %v2646_v53  ;;  %1658 = vmatprep.mubr.f32.mxu0 %v3997_v24  ;;  %v1423_v53 = vld [vmem:[%s3963_s4 + $0x10] sm:$0xff] }
 0x409   : > { %2649 = vmatprep.subr.bf16.mxu0 %v3135_v58 }
 0x40c   : > { %2651 = vmatpush1.bf16.msra.mxu0 %v3139_v59 }
 0x40d   : > { %2653 = vmatprep.subr.bf16.mxu0 %v3623_v35 }
 0x410   : > { %2655 = vmatpush1.bf16.msra.mxu0 %v3628_v52 }
 0x411   : > { %2656 = vmatprep.subr.bf16.mxu0 %v3996_v3 }
 0x414   : > { %2657 = vmatpush1.bf16.msra.mxu0 %v3996_v3  ;;  %v1518_v3 = vpop.permute.xlu1 %1517 }
 0x415   : > { %2659 = vmatprep.subr.bf16.mxu0 %v3455_v61 }
 0x418   : > { %2661 = vmatpush1.bf16.msra.mxu0 %v3460_v8 }
 0x419   : > { %1614 = vmatprep.subr.mxu0 %v3637_v31 }
 0x41c   : > { %1615 = vmatpush1.msra.mxu0 %v3642_v23 }
 0x41d   : > { %2459 = vmatmul.mubr.msk.f32.vlgmr.msra.gmra.mrb[2].mxu0 %vm799_vm6, %v1423_v53  ;;  %2751 = vmatprep.subr.bf16.mxu0 %v3330_v13  ;;  %v1874_v13 = vld [vmem:[%s3969_s10] sm:$0xff] }
 0x41e   : > { %2753 = vmatpush1.bf16.msra.mxu0 %v3333_v18  ;;  %v1782_v18 = vld [vmem:[%s3964_s5 + $0x8] sm:$0xff] }
 0x41f   : > { %1947 = vmatprep.mubr.f32.mxu1 %v1782_v18 }
 0x4f0   : > { %v1660_v46 = vpop.f32.mrb[2].mxu0 }
 0x4f1   : > { %v2844_v11 = vadd.f32 %v1660_v46, %v1518_v3  ;;  %v1662_v47 = vpop.f32.mrb[3].mxu0 }
 0x4f2   : > { %v2845_v6 = vadd.f32 %v1662_v47, %v1518_v3 }
 0x4f3   : > { %vm1665_vm13 = vcmp.ge.f32.partialorder %v2844_v11, 0.0  ;;  %v1667_v9 = vmul.f32 0.2, %v2844_v11 }
 0x4f4   : > { %vm1666_vm14 = vcmp.ge.f32.partialorder %v2845_v6, 0.0  ;;  %v1668_v1 = vmul.f32 0.2, %v2845_v6 }
 0x4f5   : > { %v3651_v20 = vsel %vm1665_vm13, %v2844_v11, %v1667_v9 }
 0x4f6   : > { %v3653_v8 = vsel %vm1666_vm14, %v2845_v6, %v1668_v1  ;;  %1676 = vrot.lane.b32.xlu1 %v3651_v20, %s2893_s27 }
 0x4f7   : > { %1672 = vrot.lane.b32.xlu0 %v3653_v8, %s2893_s27 }
 0x4fa   : > { %1689 = vrot.lane.b32.xlu1 %v3651_v20, %s2894_s28 }
 0x4fb   : > { %1686 = vrot.lane.b32.xlu0 %v3653_v8, %s2894_s28 }
 0x4fe   : > { %1702 = vrot.lane.b32.xlu1 %v3651_v20, %s2895_s29 }
 0x4ff   : > { %1699 = vrot.lane.b32.xlu0 %v3653_v8, %s2895_s29 }
 0x502   : > { %1715 = vrot.lane.b32.xlu1 %v3651_v20, %s2896_s30 }
 0x503   : > { %1712 = vrot.lane.b32.xlu0 %v3653_v8, %s2896_s30 }
 0x506   : > { %1731 = vrot.lane.b32.xlu1 %v3653_v8, %s2897_s13 }
 0x507   : > { %1729 = vrot.lane.b32.xlu0 %v3651_v20, %s2897_s13 }
 0x50a   : > { %1744 = vrot.lane.b32.xlu1 %v3653_v8, %s2899_s15 }
 0x50b   : > { %1742 = vrot.lane.b32.xlu0 %v3651_v20, %s2899_s15 }
 0x50e   : > { %1757 = vrot.lane.b32.xlu1 %v3653_v8, %s2898_s14 }
 0x50f   : > { %1755 = vrot.lane.b32.xlu0 %v3651_v20, %s2898_s14 }
 0x512   : > { %1770 = vrot.lane.b32.xlu1 %v3653_v8, %s2900_s16 }
 0x513   : > { %1768 = vrot.lane.b32.xlu0 %v3651_v20, %s2900_s16 }
 0x517   : > { %1877 = vperm.xlu0 %2877, %v1874_v13  }
 0x568   : > { %v1677_v53 = vpop.permute.xlu1 %1676 }
 0x569   : > { %v1673_v3 = vpop.permute.xlu0 %1672 }
 0x56a   : > { %v1678_v46 = vsel %vm517_vm0, %v1677_v53, %v1673_v3  ;;  %v1681_v11 = vsel %vm517_vm0, %v1673_v3, %v1677_v53 }
 0x56b   : > { %v1682_v47 = vmul.f32 %v1681_v11, %v3046_v14  ;;  %v1683_v6 = vmul.f32 %v1678_v46, %v3050_v16 }
 0x56c   : > { %v1690_v1 = vpop.permute.xlu1 %1689 }
 0x56d   : > { %v2668_v9 = vpack.c.bf16 %v1682_v47, %v3514_v26  ;;  %v1687_v23 = vpop.permute.xlu0 %1686  ;;  %v2666_v13 = vpack.c.bf16 %v1683_v6, %v3517_v10 }
 0x56e   : > { %v1691_v18 = vsel %vm539_vm1, %v1690_v1, %v1687_v23  ;;  %v1694_v53 = vsel %vm539_vm1, %v1687_v23, %v1690_v1 }
 0x56f   : > { %2667 = vmatprep.subr.bf16.mxu1 %v2666_v13  ;;  %2755 = vmatprep.subr.bf16.mxu0 %v2666_v13  ;;  %v3703_v3 = vmul.f32 %v1691_v18, %v3058_v22  ;;  %v3708_v10 = vmul.f32 %v1694_v53, %v3069_v29 }
 0x570   : > { %2669 = vmatpush1.bf16.msra.mxu1 %v2668_v9  ;;  %2757 = vmatpush1.bf16.msra.mxu0 %v2668_v9  ;;  %v1703_v26 = vpop.permute.xlu1 %1702 }
 0x571   : > { %2671 = vmatprep.subr.bf16.mxu1 %v3082_v36  ;;  %v1700_v46 = vpop.permute.xlu0 %1699  ;;  %v2678_v11 = vpack.c.bf16 %v3997_v24, %v3703_v3  ;;  %v2680_v36 = vpack.c.bf16 %v3997_v24, %v3708_v10 }
 0x572   : > { %v1704_v47 = vsel %vm561_vm2, %v1703_v26, %v1700_v46 }
 0x573   : > { %v1709_v23 = vmul.f32 %v1704_v47, %v3088_v38 }
 0x574   : > { %2673 = vmatpush1.bf16.msra.mxu1 %v3096_v41  ;;  %v1707_v41 = vsel %vm561_vm2, %v1700_v46, %v1703_v26  ;;  %v1716_v1 = vpop.permute.xlu1 %1715 }
 0x575   : > { %2675 = vmatprep.subr.bf16.mxu1 %v3529_v49  ;;  %v1708_v6 = vmul.f32 %v1707_v41, %v3107_v45  ;;  %v3721_v9 = vpack.c.bf16 %v1709_v23, %v3541_v51  ;;  %v1713_v13 = vpop.permute.xlu0 %1712 }
 0x576   : > { %v1717_v53 = vsel %vm583_vm4, %v1716_v1, %v1713_v13  ;;  %v1720_v26 = vsel %vm583_vm4, %v1713_v13, %v1716_v1 }
 0x577   : > { %v3726_v18 = vpack.c.bf16 %v1708_v6, %v3546_v32  ;;  %v3733_v51 = vmul.f32 %v1717_v53, %v3131_v57  ;;  %v3738_v46 = vmul.f32 %v1720_v26, %v3151_v4 }
 0x578   : > { %2677 = vmatpush1.bf16.msra.mxu1 %v3534_v0 }
 0x579   : > { %2679 = vmatprep.subr.bf16.mxu1 %v2678_v11  ;;  %v2698_v32 = vpack.c.bf16 %v3997_v24, %v3733_v51  ;;  %v1726_v11 = vmul.f32 %v3653_v8, %v3196_v27  ;;  %v1730_v41 = vpop.permute.xlu0 %1729 }
 0x57b   : > { %v3751_v47 = vpack.c.bf16 %v1726_v11, %v3570_v28  ;;  %v1781_v11 = vld [vmem:[%s3964_s5] sm:$0xff] }
 0x57c   : > { %2681 = vmatpush1.bf16.msra.mxu1 %v2680_v36  ;;  %v1732_v36 = vpop.permute.xlu1 %1731 }
 0x57d   : > { %2683 = vmatprep.subr.bf16.mxu1 %v3361_v7  ;;  %v1737_v8 = vsel %vm616_vm7, %v1732_v36, %v1730_v41  ;;  %v1743_v1 = vpop.permute.xlu0 %1742 }
 0x57e   : > { %v3763_v28 = vmul.f32 %v1737_v8, %v3221_v37 }
 0x580   : > { %2685 = vmatpush1.bf16.msra.mxu1 %v3366_v60  ;;  %v1745_v6 = vpop.permute.xlu1 %1744  ;;  %v2718_v13 = vpack.c.bf16 %v3997_v24, %v3763_v28 }
 0x581   : > { %2687 = vmatprep.subr.bf16.mxu1 %v3721_v9  ;;  %v1750_v53 = vsel %vm638_vm8, %v1745_v6, %v1743_v1 }
 0x582   : > { %v1752_v26 = vmul.f32 %v1750_v53, %v3258_v39 }
 0x584   : > { %2689 = vmatpush1.bf16.msra.mxu1 %v3726_v18 }
 0x585   : > { %2691 = vmatprep.subr.bf16.mxu1 %v3171_v17  ;;  %v2700_v17 = vpack.c.bf16 %v3997_v24, %v3738_v46 }
 0x588   : > { %2693 = vmatpush1.bf16.msra.mxu1 %v3187_v25  ;;  %v1725_v25 = vmul.f32 %v3651_v20, %v3204_v30  ;;  %v1733_v20 = vsel %vm616_vm7, %v1730_v41, %v1732_v36  ;;  %v1756_v36 = vpop.permute.xlu0 %1755 }
 0x589   : > { %2695 = vmatprep.subr.bf16.mxu1 %v3559_v54 }
 0x58a   : > { %v3756_v23 = vpack.c.bf16 %v1725_v25, %v3576_v42  ;;  %v3768_v42 = vmul.f32 %v1733_v20, %v3235_v48  ;;  %v1758_v25 = vpop.permute.xlu1 %1757 }
 0x58b   : > { %v1763_v8 = vsel %vm660_vm3, %v1758_v25, %v1756_v36 }
 0x58c   : > { %2697 = vmatpush1.bf16.msra.mxu1 %v3564_v55  ;;  %v3791_v20 = vmul.f32 %v1763_v8, %v3103_v44 }
 0x58d   : > { %2699 = vmatprep.subr.bf16.mxu1 %v2698_v32 }
 0x590   : > { %2701 = vmatpush1.bf16.msra.mxu1 %v2700_v17  ;;  %v2726_v17 = vpack.c.bf16 %v1752_v26, %v3601_v33  ;;  %v1759_v33 = vsel %vm660_vm3, %v1756_v36, %v1758_v25 }
 0x591   : > { %2703 = vmatprep.subr.bf16.mxu1 %v3391_v40 }
 0x594   : > { %2705 = vmatpush1.bf16.msra.mxu1 %v3396_v5 }
 0x595   : > { %2707 = vmatprep.subr.bf16.mxu1 %v3751_v47 }
 0x598   : > { %2709 = vmatpush1.bf16.msra.mxu1 %v3756_v23 }
 0x599   : > { %2711 = vmatprep.subr.bf16.mxu1 %v3242_v50  ;;  %v2720_v50 = vpack.c.bf16 %v3997_v24, %v3768_v42 }
 0x59c   : > { %2713 = vmatpush1.bf16.msra.mxu1 %v3253_v56  ;;  %v1746_v56 = vsel %vm638_vm8, %v1743_v1, %v1745_v6  ;;  %v1771_v6 = vpop.permute.xlu1 %1770  ;;  %v1769_v1 = vpop.permute.xlu0 %1768 }
 0x59d   : > { %2715 = vmatprep.subr.bf16.mxu1 %v3589_v15  ;;  %v1751_v32 = vmul.f32 %v1746_v56, %v3269_v62  ;;  %v1776_v53 = vsel %vm682_vm5, %v1771_v6, %v1769_v1 }
 0x59f   : > { %v2728_v41 = vpack.c.bf16 %v1751_v32, %v3606_v34  ;;  %v3796_v34 = vmul.f32 %v1759_v33, %v3100_v43  ;;  %v3999_v32 = vld [vmem:[#allocation11_spill] sm:$0xff] }
 0x5a0   : > { %2717 = vmatpush1.bf16.msra.mxu1 %v3594_v21 }
 0x5a1   : > { %2719 = vmatprep.subr.bf16.mxu1 %v2718_v13  ;;  %v2738_v13 = vpack.c.bf16 %v3997_v24, %v3791_v20 }
 0x5a4   : > { %2721 = vmatpush1.bf16.msra.mxu1 %v2720_v50  ;;  %v1778_v50 = vmul.f32 %v3162_v12, %v1776_v53  ;;  %v1783_v12 = vld [vmem:[%s3964_s5 + $0x10] sm:$0xff] }
 0x5a5   : > { %2723 = vmatprep.subr.bf16.mxu1 %v3421_v63 }
 0x5a6   : > { %v3809_v26 = vpack.c.bf16 %v1778_v50, %v3637_v31 }
 0x5a8   : > { %2725 = vmatpush1.bf16.msra.mxu1 %v3426_v2 }
 0x5a9   : > { %2727 = vmatprep.subr.bf16.mxu1 %v2726_v17 }
 0x5ab   : > { %1948 = vmatmul.mubr.f32.vlgmr.msra.gmra.mrb[4].mxu1 %v1781_v11  ;;  %v4000_v11 = vld [vmem:[#allocation12_spill] sm:$0xff] }
 0x5ac   : > { %2729 = vmatpush1.bf16.msra.mxu1 %v2728_v41  ;;  %2018 = vmatprep.mubr.f32.mxu1 %v3997_v24 }
 0x5ad   : > { %2731 = vmatprep.subr.bf16.mxu1 %v3135_v58  ;;  %v2740_v58 = vpack.c.bf16 %v3997_v24, %v3796_v34 }
 0x5b0   : > { %2733 = vmatpush1.bf16.msra.mxu1 %v3139_v59  ;;  %v1772_v59 = vsel %vm682_vm5, %v1769_v1, %v1771_v6 }
 0x5b1   : > { %2735 = vmatprep.subr.bf16.mxu1 %v3623_v35  ;;  %v1777_v56 = vmul.f32 %v3179_v19, %v1772_v59  ;;  %v1878_v19 = vpop.permute.xlu0 %1877 }
 0x5b3   : > { %v3814_v25 = vpack.c.bf16 %v1777_v56, %v4000_v11 }
 0x5b4   : > { %2737 = vmatpush1.bf16.msra.mxu1 %v3628_v52 }
 0x5b5   : > { %2739 = vmatprep.subr.bf16.mxu1 %v2738_v13 }
 0x5b8   : > { %2741 = vmatpush1.bf16.msra.mxu1 %v2740_v58 }
 0x5b9   : > { %2743 = vmatprep.subr.bf16.mxu1 %v3455_v61 }
 0x5bc   : > { %2745 = vmatpush1.bf16.msra.mxu1 %v3999_v32 }
 0x5bd   : > { %2747 = vmatprep.subr.bf16.mxu1 %v3809_v26 }
 0x5c0   : > { %2749 = vmatpush1.bf16.msra.mxu1 %v3814_v25 }
 0x5c1   : > { %2815 = vmatprep.subr.bf16.mxu1 %v2726_v17  ;;  %v2142_v17 = vld [vmem:[%s3965_s6 + $0x8] sm:$0xff] }
 0x5c2   : > { %2307 = vmatprep.mubr.f32.mxu0 %v2142_v17 }
 0x5c3   : > { %2460 = vmatmul.mubr.msk.f32.vlgmr.msra.gmra.mrb[4].mxu1 %vm799_vm6, %v1783_v12 }
 0x5c4   : > { %2817 = vmatpush1.bf16.msra.mxu1 %v2728_v41  ;;  %2378 = vmatprep.mubr.f32.mxu1 %v3997_v24  ;;  %v2234_v24 = vld [vmem:[%s3970_s11] sm:$0xff] }
 0x696   : > { %v2020_v31 = vpop.f32.mrb[4].mxu1 }
 0x697   : > { %v2846_v36 = vadd.f32 %v2020_v31, %v1878_v19  ;;  %v2022_v8 = vpop.f32.mrb[5].mxu1 }
 0x698   : > { %v2847_v33 = vadd.f32 %v2022_v8, %v1878_v19  ;;  %v4001_v19 = vld [vmem:[#allocation4_spill] sm:$0xff]  ;;  %v4002_v8 = vld [vmem:[#allocation3_spill] sm:$0xff] }
 0x699   : > { %vm2025_vm15 = vcmp.ge.f32.partialorder %v2846_v36, 0.0  ;;  %v2027_v6 = vmul.f32 0.2, %v2846_v36 }
 0x69a   : > { %vm2026_vm9 = vcmp.ge.f32.partialorder %v2847_v33, 0.0  ;;  %v2028_v1 = vmul.f32 0.2, %v2847_v33 }
 0x69b   : > { %v3822_v13 = vsel %vm2025_vm15, %v2846_v36, %v2027_v6 }
 0x69c   : > { %v3824_v53 = vsel %vm2026_vm9, %v2847_v33, %v2028_v1  ;;  %2036 = vrot.lane.b32.xlu0 %v3822_v13, %s2893_s27 }
 0x69d   : > { %2032 = vrot.lane.b32.xlu1 %v3824_v53, %s2893_s27  ;;  %s413_s27 = scalar_lea.vmem %s3971_s12, %s2464_s23 }
 0x6a0   : > { %2049 = vrot.lane.b32.xlu0 %v3822_v13, %s2894_s28 }
 0x6a1   : > { %2046 = vrot.lane.b32.xlu1 %v3824_v53, %s2894_s28 }
 0x6a4   : > { %2062 = vrot.lane.b32.xlu0 %v3822_v13, %s2895_s29 }
 0x6a5   : > { %2059 = vrot.lane.b32.xlu1 %v3824_v53, %s2895_s29 }
 0x6a8   : > { %2075 = vrot.lane.b32.xlu0 %v3822_v13, %s2896_s30 }
 0x6a9   : > { %2072 = vrot.lane.b32.xlu1 %v3824_v53, %s2896_s30 }
 0x6ac   : > { %2104 = vrot.lane.b32.xlu0 %v3824_v53, %s2899_s15 }
 0x6ad   : > { %2102 = vrot.lane.b32.xlu1 %v3822_v13, %s2899_s15 }
 0x6b0   : > { %2117 = vrot.lane.b32.xlu0 %v3824_v53, %s2898_s14 }
 0x6b1   : > { %2115 = vrot.lane.b32.xlu1 %v3822_v13, %s2898_s14 }
 0x6b4   : > { %2091 = vrot.lane.b32.xlu0 %v3824_v53, %s2897_s13 }
 0x6b5   : > { %2089 = vrot.lane.b32.xlu1 %v3822_v13, %s2897_s13 }
 0x6b8   : > { %2130 = vrot.lane.b32.xlu0 %v3824_v53, %s2900_s16 }
 0x6b9   : > { %2128 = vrot.lane.b32.xlu1 %v3822_v13, %s2900_s16 }
 0x6bd   : > { %2237 = vperm.xlu1 %2878, %v2234_v24  }
 0x70e   : > { %v2037_v41 = vpop.permute.xlu0 %2036 }
 0x70f   : > { %v2033_v58 = vpop.permute.xlu1 %2032 }
 0x710   : > { %v2038_v59 = vsel %vm517_vm0, %v2037_v41, %v2033_v58  ;;  %v2041_v50 = vsel %vm517_vm0, %v2033_v58, %v2037_v41 }
 0x711   : > { %v2042_v56 = vmul.f32 %v2041_v50, %v3046_v14  ;;  %v2043_v11 = vmul.f32 %v2038_v59, %v3050_v16 }
 0x712   : > { %v2050_v12 = vpop.permute.xlu0 %2049 }
 0x713   : > { %v2760_v31 = vpack.c.bf16 %v4001_v19, %v2042_v56  ;;  %v2047_v36 = vpop.permute.xlu1 %2046  ;;  %v2758_v33 = vpack.c.bf16 %v4002_v8, %v2043_v11 }
 0x714   : > { %v2051_v6 = vsel %vm539_vm1, %v2050_v12, %v2047_v36  ;;  %v2054_v1 = vsel %vm539_vm1, %v2047_v36, %v2050_v12 }
 0x715   : > { %v2056_v24 = vmul.f32 %v2051_v6, %v3058_v22  ;;  %2759 = vmatprep.subr.bf16.mxu0 %v2758_v33  ;;  %v2055_v14 = vmul.f32 %v2054_v1, %v3069_v29 }
 0x716   : > { %2761 = vmatpush1.bf16.msra.mxu0 %v2760_v31  ;;  %v2063_v17 = vpop.permute.xlu0 %2062  ;;  %v4003_v31 = vld [vmem:[#allocation5_spill] sm:$0xff] }
 0x717   : > { %v2060_v41 = vpop.permute.xlu1 %2059  ;;  %2763 = vmatprep.subr.bf16.mxu0 %v3529_v49  ;;  %v2766_v16 = vpack.c.bf16 %v2056_v24, %v3703_v3  ;;  %v2768_v50 = vpack.c.bf16 %v2055_v14, %v3708_v10 }
 0x718   : > { %v2064_v56 = vsel %vm561_vm2, %v2063_v17, %v2060_v41  ;;  %v2067_v3 = vsel %vm561_vm2, %v2060_v41, %v2063_v17 }
 0x719   : > { %v2068_v6 = vmul.f32 %v2067_v3, %v3107_v45  ;;  %v2882_v3 = vld [vmem:[%s2984_s26 + $0x8] sm:$0xff] }
 0x71a   : > { %2765 = vmatpush1.bf16.msra.mxu0 %v3534_v0  ;;  %v2076_v58 = vpop.permute.xlu0 %2075  ;;  %v2069_v0 = vmul.f32 %v2064_v56, %v3088_v38 }
 0x71b   : > { %v2073_v59 = vpop.permute.xlu1 %2072  ;;  %2767 = vmatprep.subr.bf16.mxu0 %v2766_v16 }
 0x71c   : > { %v2080_v41 = vsel %vm583_vm4, %v2073_v59, %v2076_v58 }
 0x71e   : > { %2769 = vmatpush1.bf16.msra.mxu0 %v2768_v50  ;;  %v2105_v22 = vpop.permute.xlu0 %2104 }
 0x71f   : > { %v2103_v11 = vpop.permute.xlu1 %2102  ;;  %2771 = vmatprep.subr.bf16.mxu0 %v3361_v7  ;;  %v4004_v7 = vld [vmem:[#allocation6_spill] sm:$0xff] }
 0x720   : > { %v2106_v49 = vsel %vm638_vm8, %v2103_v11, %v2105_v22  ;;  %v2110_v29 = vsel %vm638_vm8, %v2105_v22, %v2103_v11 }
 0x721   : > { %v2111_v12 = vmul.f32 %v2106_v49, %v3269_v62  ;;  %v2112_v19 = vmul.f32 %v2110_v29, %v3258_v39  ;;  %v4005_v39 = vld [vmem:[#allocation7_spill] sm:$0xff] }
 0x722   : > { %2773 = vmatpush1.bf16.msra.mxu0 %v3366_v60  ;;  %v2118_v10 = vpop.permute.xlu0 %2117  ;;  %v2778_v24 = vpack.c.bf16 %v4005_v39, %v2069_v0  ;;  %v2077_v60 = vsel %vm583_vm4, %v2076_v58, %v2073_v59 }
 0x723   : > { %v2820_v36 = vpack.c.bf16 %v4003_v31, %v2111_v12  ;;  %v2116_v8 = vpop.permute.xlu1 %2115  ;;  %2775 = vmatprep.subr.bf16.mxu0 %v3721_v9  ;;  %v2818_v33 = vpack.c.bf16 %v4004_v7, %v2112_v19  ;;  %v4006_v9 = vld [vmem:[#allocation8_spill] sm:$0xff]  ;;  %v2082_v14 = vmul.f32 %v2077_v60, %v3131_v57 }
 0x724   : > { %v2123_v1 = vsel %vm660_vm3, %v2118_v10, %v2116_v8  ;;  %v2119_v38 = vsel %vm660_vm3, %v2116_v8, %v2118_v10  ;;  %v2780_v17 = vpack.c.bf16 %v4006_v9, %v2068_v6 }
 0x725   : > { %v2125_v62 = vmul.f32 %v2123_v1, %v3103_v44  ;;  %2819 = vmatprep.subr.bf16.mxu1 %v2818_v33  ;;  %v2124_v45 = vmul.f32 %v2119_v38, %v3100_v43  ;;  %v2786_v43 = vpack.c.bf16 %v2082_v14, %v3733_v51 }
 0x726   : > { %2777 = vmatpush1.bf16.msra.mxu0 %v3726_v18  ;;  %2821 = vmatpush1.bf16.msra.mxu1 %v2820_v36  ;;  %v2092_v44 = vpop.permute.xlu0 %2091 }
 0x727   : > { %2779 = vmatprep.subr.bf16.mxu0 %v2778_v24  ;;  %2823 = vmatprep.subr.bf16.mxu1 %v3623_v35  ;;  %v2090_v16 = vpop.permute.xlu1 %2089  ;;  %v2826_v50 = vpack.c.bf16 %v2125_v62, %v3791_v20  ;;  %v2081_v35 = vmul.f32 %v2080_v41, %v3151_v4  ;;  %v2828_v18 = vpack.c.bf16 %v2124_v45, %v3796_v34  ;;  %v2879_v4 = vld [vmem:[%s3960_s1 + $0x18] ss:$0 sm:$0xff]  ;;  %v2143_v34 = vld [vmem:[%s3965_s6 + $0x10] sm:$0xff] }
 0x729   : > { %v2788_v20 = vpack.c.bf16 %v2081_v35, %v3738_v46  ;;  %v2085_v46 = vmul.f32 %v3822_v13, %v3204_v30 }
 0x72a   : > { %2781 = vmatpush1.bf16.msra.mxu0 %v2780_v17  ;;  %2825 = vmatpush1.bf16.msra.mxu1 %v3628_v52  ;;  %v2131_v57 = vpop.permute.xlu0 %2130 }
 0x72b   : > { %2783 = vmatprep.subr.bf16.mxu0 %v3559_v54  ;;  %2827 = vmatprep.subr.bf16.mxu1 %v2826_v50  ;;  %v2129_v58 = vpop.permute.xlu1 %2128 }
 0x72c   : > { %v2136_v52 = vsel %vm682_vm5, %v2131_v57, %v2129_v58  ;;  %v2132_v54 = vsel %vm682_vm5, %v2129_v58, %v2131_v57 }
 0x72e   : > { %2785 = vmatpush1.bf16.msra.mxu0 %v3564_v55  ;;  %2829 = vmatpush1.bf16.msra.mxu1 %v2828_v18  ;;  %v2138_v55 = vmul.f32 %v2879_v4, %v2136_v52 }
 0x72f   : > { %2787 = vmatprep.subr.bf16.mxu0 %v2786_v43  ;;  %2831 = vmatprep.subr.bf16.mxu1 %v3455_v61  ;;  %v2086_v61 = vmul.f32 %v3824_v53, %v3196_v27  ;;  %v4007_v27 = vld [vmem:[#allocation9_spill] sm:$0xff] }
 0x732   : > { %2789 = vmatpush1.bf16.msra.mxu0 %v2788_v20  ;;  %2833 = vmatpush1.bf16.msra.mxu1 %v3999_v32 }
 0x733   : > { %2791 = vmatprep.subr.bf16.mxu0 %v3391_v40  ;;  %2835 = vmatprep.subr.bf16.mxu1 %v3809_v26  ;;  %v2880_v40 = vld [vmem:[%s3960_s1 + $0x10] ss:$0 sm:$0xff]  ;;  %v2798_v26 = vpack.c.bf16 %v4007_v27, %v2086_v61 }
 0x734   : > { %v2137_v51 = vmul.f32 %v2880_v40, %v2132_v54 }
 0x736   : > { %2793 = vmatpush1.bf16.msra.mxu0 %v3396_v5  ;;  %2837 = vmatpush1.bf16.msra.mxu1 %v3814_v25  ;;  %v2097_v5 = vsel %vm616_vm7, %v2092_v44, %v2090_v16  ;;  %v2093_v25 = vsel %vm616_vm7, %v2090_v16, %v2092_v44 }
 0x737   : > { %2795 = vmatprep.subr.bf16.mxu0 %v3751_v47  ;;  %2338 = vmatprep.subr.mxu1 %v2138_v55  ;;  %v4008_v47 = vld [vmem:[#allocation10_spill] sm:$0xff]  ;;  %v2099_v30 = vmul.f32 %v2097_v5, %v3221_v37  ;;  %v2098_v13 = vmul.f32 %v2093_v25, %v3235_v48  ;;  %v2141_v37 = vld [vmem:[%s3965_s6] sm:$0xff] }
 0x738   : > { %v2800_v32 = vpack.c.bf16 %v4008_v47, %v2085_v46 }
 0x739   : > { %v2806_v53 = vpack.c.bf16 %v2099_v30, %v3763_v28 }
 0x73a   : > { %2797 = vmatpush1.bf16.msra.mxu0 %v3756_v23  ;;  %2339 = vmatpush1.msra.mxu1 %v2137_v51  ;;  %v2808_v23 = vpack.c.bf16 %v2098_v13, %v3768_v42 }
 0x73b   : > { %2799 = vmatprep.subr.bf16.mxu0 %v2798_v26  ;;  %2461 = vmatmul.mubr.msk.f32.vlgmr.msra.gmra.mrb[6].mxu1 %vm799_vm6, %v2143_v34 }
 0x73c   : > { %v2238_v28 = vpop.permute.xlu1 %2237 }
 0x73e   : > { %2801 = vmatpush1.bf16.msra.mxu0 %v2800_v32 }
 0x73f   : > { %2803 = vmatprep.subr.bf16.mxu0 %v3589_v15 }
 0x742   : > { %2805 = vmatpush1.bf16.msra.mxu0 %v3594_v21 }
 0x743   : > { %2807 = vmatprep.subr.bf16.mxu0 %v2806_v53 }
 0x746   : > { %2809 = vmatpush1.bf16.msra.mxu0 %v2808_v23 }
 0x747   : > { %2811 = vmatprep.subr.bf16.mxu0 %v3421_v63 }
 0x74a   : > { %2813 = vmatpush1.bf16.msra.mxu0 %v3426_v2  ;;  %v2881_v2 = vld [vmem:[%s2984_s26] sm:$0xff] }
 0x74d   : > { %2308 = vmatmul.mubr.f32.vlgmr.msra.gmra.mrb[4].mxu0 %v2141_v37 }
 0x80e   : > { %v2380_v48 = vpop.f32.mrb[6].mxu1 }
 0x80f   : > { %v2382_v15 = vpop.f32.mrb[7].mxu1 }
 0x820   : > { %v2309_v21 = vpop.f32.mrb[4].mxu0 }
 0x821   : > { %v2310_v59 = vadd.f32 %v2309_v21, %v2238_v28  ;;  %v2311_v56 = vpop.f32.mrb[5].mxu0 }
 0x822   : > { %v2312_v42 = vadd.f32 %v2311_v56, %v2238_v28 }
 0x823   : > { %v2381_v22 = vadd.f32 %v2380_v48, %v2310_v59 }
 0x824   : > { %v2383_v11 = vadd.f32 %v2382_v15, %v2312_v42 }
 0x825   : > { %v2385_v49 = vmul.f32 0.2, %v2381_v22 }
 0x826   : > { %v2386_v63 = vmul.f32 0.2, %v2383_v11 }
 0x827   : > { %v2387_v29 = vadd.f32 %v2881_v2, %v2385_v49 }
 0x828   : > { %v2388_v0 = vadd.f32 %v2882_v3, %v2386_v63 }
 0x829   : > { %2389 = vst [vmem:[%s413_s27] sm:$0xff] %v2387_v29 }
 0x82a   : > { %2390 = vst [vmem:[%s413_s27 + $0x8] sm:$0xff] %v2388_v0 }
 0x82b PF: > { %s22_s21 = sadd.s32 1, %s2889_s21  }
 0x82c   : > { %p19_p4 = scmp.ge.s32.totalorder %s22_s21, 4  }
 0x82e   :  { %21 = sbr.rel (!%p19_p4) target bundleno = 1 (0x1), region = 98 }

</bundles_post_ra>
